<compile_context>
chip_gen: v7x
topology: tpu7x:2x2x1
jax: 0.10.0
libtpu: 0.0.40
codegen_flags: <defaults>
</compile_context>

<pallas_src>
import math

import jax
import jax.numpy as jnp
from jax.experimental import pallas as pl
from jax.experimental.pallas import tpu as pltpu

# ----------------------- small synthetic BERT config -----------------------
BATCH = 2
SEQ = 8
HIDDEN = 32
NUM_HEADS = 4
HEAD_DIM = HIDDEN // NUM_HEADS
INTERMEDIATE = 64
NUM_LAYERS = 2
VOCAB = 50
MAX_POS = 16
TYPE_VOCAB = 2
NUM_TASKS = 14            # 13 heads with 4 classes + 1 head with 2 classes
NUM_TASKS_PAD = 16        # pad task axis for aligned lane slices (extra tasks are dummies)
CLASSES_PAD = 4           # every head padded to 4 logits
LN_EPS = 1e-12


# ------------------------------ fused kernel --------------------------------
def fused_chexbert_kernel(emb_ref, maskb_ref, eg_ref, eb_ref,
                          wq_ref, bq_ref, wk_ref, bk_ref, wv_ref, bv_ref,
                          wo_ref, bo_ref, g1_ref, b1_ref,
                          wi_ref, bi_ref, wf_ref, bf_ref, g2_ref, b2_ref,
                          hw_ref, hb_ref,
                          preds_ref,
                          x_sc, ctx_sc):
    layer = pl.program_id(1)
    n_layers = pl.num_programs(1)

    def ln(v, g, b):                                   # f32 LayerNorm (safe on v5e too)
        mu = jnp.mean(v, axis=-1, keepdims=True)
        var = jnp.mean(jnp.square(v - mu), axis=-1, keepdims=True)
        return (v - mu) * jax.lax.rsqrt(var + LN_EPS) * g + b

    # ---- layer 0: embedding LayerNorm into the resident activation scratch ----
    @pl.when(layer == 0)
    def _():
        x_sc[...] = ln(emb_ref[...].astype(jnp.float32), eg_ref[...], eb_ref[...])

    x = x_sc[...]                                      # (S, H) f32, resident across layers
    xb = x.astype(jnp.bfloat16)

    def proj(inp, w_ref, b_ref):
        return jnp.dot(inp, w_ref[...], preferred_element_type=jnp.float32) + b_ref[...]

    q = proj(xb, wq_ref, bq_ref)                       # (S, H) f32
    k = proj(xb, wk_ref, bk_ref)
    v = proj(xb, wv_ref, bv_ref)

    mb = maskb_ref[...]                                # (1, S) additive mask bias, f32
    scale = 1.0 / math.sqrt(HEAD_DIM)
    for h in range(NUM_HEADS):                         # static; results go to ctx scratch (no concat)
        sl = slice(h * HEAD_DIM, (h + 1) * HEAD_DIM)
        qs = q[:, sl].astype(jnp.bfloat16)
        ks = k[:, sl].astype(jnp.bfloat16)
        vs = v[:, sl].astype(jnp.bfloat16)
        sc = jnp.einsum('qd,kd->qk', qs, ks,
                        preferred_element_type=jnp.float32) * scale + mb
        sc = sc - jnp.max(sc, axis=-1, keepdims=True)
        p = jnp.exp(sc)
        p = p * pl.reciprocal(jnp.sum(p, axis=-1, keepdims=True), approx=True)
        ctx_sc[:, sl] = jnp.dot(p.astype(jnp.bfloat16), vs,
                                preferred_element_type=jnp.float32)

    attn = jnp.dot(ctx_sc[...].astype(jnp.bfloat16), wo_ref[...],
                   preferred_element_type=jnp.float32) + bo_ref[...]
    h1 = ln(x + attn, g1_ref[...], b1_ref[...])        # post-LN (BERT)

    ff = jnp.dot(h1.astype(jnp.bfloat16), wi_ref[...],
                 preferred_element_type=jnp.float32) + bi_ref[...]
    ff = jax.nn.gelu(ff, approximate=True)             # TODO(synk): erf-GELU in real BERT
    ff = jnp.dot(ff.astype(jnp.bfloat16), wf_ref[...],
                 preferred_element_type=jnp.float32) + bf_ref[...]
    out = ln(h1 + ff, g2_ref[...], b2_ref[...])
    x_sc[...] = out

    # ---- last layer: 14 classification heads + argmax on the CLS row ----
    @pl.when(layer == n_layers - 1)
    def _():
        logits = jnp.dot(out.astype(jnp.bfloat16), hw_ref[...],
                         preferred_element_type=jnp.float32) + hb_ref[...]   # (S, 4*NTP) f32
        logits = logits[0:1, :]                                              # CLS token row
        best = logits[:, 0:NUM_TASKS_PAD]
        arg = jnp.zeros(best.shape, jnp.int32)
        for c in range(1, CLASSES_PAD):    # class-major layout -> elementwise argmax, no slicing loops
            cand = logits[:, c * NUM_TASKS_PAD:(c + 1) * NUM_TASKS_PAD]
            take = cand > best             # strict > keeps first-index tie-break (matches torch argmax)
            arg = jnp.where(take, jnp.int32(c), arg)
            best = jnp.where(take, cand, best)
        preds_ref[...] = arg


# ------------------------------ wrapper --------------------------------------
def chexbert_forward(input_ids, attention_mask, params):
    B, S = input_ids.shape
    # embeddings (gather is glue in plain JAX)
    emb = (params['word_emb'][input_ids]
           + params['pos_emb'][jnp.arange(S)][None, :, :]
           + params['type_emb'][0][None, None, :]).astype(jnp.float32)           # (B, S, H)
    mask_bias = ((1.0 - attention_mask.astype(jnp.float32)) * -1e9)[:, None, :]  # (B, 1, S) f32

    H, I, NTP, CP = HIDDEN, INTERMEDIATE, NUM_TASKS_PAD, CLASSES_PAD
    per_layer = lambda last2: pl.BlockSpec((None,) + last2, lambda b, l: (l, 0, 0))
    shared = lambda shp: pl.BlockSpec(shp, lambda b, l: (0, 0))

    in_specs = [
        pl.BlockSpec((None, S, H), lambda b, l: (b, 0, 0)),   # emb
        pl.BlockSpec((None, 1, S), lambda b, l: (b, 0, 0)),   # attention-mask bias
        shared((1, H)), shared((1, H)),                       # embedding LN gamma / beta
        per_layer((H, H)), per_layer((1, H)),                 # Wq, bq
        per_layer((H, H)), per_layer((1, H)),                 # Wk, bk
        per_layer((H, H)), per_layer((1, H)),                 # Wv, bv
        per_layer((H, H)), per_layer((1, H)),                 # Wo, bo
        per_layer((1, H)), per_layer((1, H)),                 # LN1 gamma / beta
        per_layer((H, I)), per_layer((1, I)),                 # Wi, bi
        per_layer((I, H)), per_layer((1, H)),                 # Wf, bf
        per_layer((1, H)), per_layer((1, H)),                 # LN2 gamma / beta
        shared((H, CP * NTP)), shared((1, CP * NTP)),         # heads W / b (class-major)
    ]

    preds_pad = pl.pallas_call(
        fused_chexbert_kernel,
        out_shape=jax.ShapeDtypeStruct((B, 1, NTP), jnp.int32),
        grid_spec=pltpu.PrefetchScalarGridSpec(
            num_scalar_prefetch=0,
            grid=(B, NUM_LAYERS),
            in_specs=in_specs,
            out_specs=pl.BlockSpec((None, 1, NTP), lambda b, l: (b, 0, 0)),
            scratch_shapes=[pltpu.VMEM((S, H), jnp.float32),   # resident activations x
                            pltpu.VMEM((S, H), jnp.float32)]), # attention context
        compiler_params=pltpu.CompilerParams(
            dimension_semantics=("parallel", "arbitrary")),
    )(emb, mask_bias,
      params['emb_ln_g'], params['emb_ln_b'],
      params['wq'], params['bq'], params['wk'], params['bk'],
      params['wv'], params['bv'], params['wo'], params['bo'],
      params['ln1_g'], params['ln1_b'],
      params['wi'], params['bi'], params['wf'], params['bf'],
      params['ln2_g'], params['ln2_b'],
      params['heads_w'], params['heads_b'])

    return preds_pad.reshape(B, NTP)[:, :NUM_TASKS]


# --------------------------- parameter building ------------------------------
def make_params(key):
    keys = jax.random.split(key, 16)

    def nrm(k, shape, scale=0.02):
        return scale * jax.random.normal(k, shape, dtype=jnp.float32)

    p = {}
    p['word_emb'] = nrm(keys[0], (VOCAB, HIDDEN))
    p['pos_emb'] = nrm(keys[1], (MAX_POS, HIDDEN))
    p['type_emb'] = nrm(keys[2], (TYPE_VOCAB, HIDDEN))
    p['emb_ln_g'] = jnp.ones((1, HIDDEN), jnp.float32)
    p['emb_ln_b'] = jnp.zeros((1, HIDDEN), jnp.float32)

    L, H, I = NUM_LAYERS, HIDDEN, INTERMEDIATE
    # stacked per-layer weights in bf16 (MXU operands); biases / LN params stay f32
    p['wq'] = nrm(keys[3], (L, H, H)).astype(jnp.bfloat16)
    p['wk'] = nrm(keys[4], (L, H, H)).astype(jnp.bfloat16)
    p['wv'] = nrm(keys[5], (L, H, H)).astype(jnp.bfloat16)
    p['wo'] = nrm(keys[6], (L, H, H)).astype(jnp.bfloat16)
    p['wi'] = nrm(keys[7], (L, H, I)).astype(jnp.bfloat16)
    p['wf'] = nrm(keys[8], (L, I, H)).astype(jnp.bfloat16)
    p['bq'] = jnp.zeros((L, 1, H), jnp.float32)
    p['bk'] = jnp.zeros((L, 1, H), jnp.float32)
    p['bv'] = jnp.zeros((L, 1, H), jnp.float32)
    p['bo'] = jnp.zeros((L, 1, H), jnp.float32)
    p['bi'] = jnp.zeros((L, 1, I), jnp.float32)
    p['bf'] = jnp.zeros((L, 1, H), jnp.float32)
    p['ln1_g'] = jnp.ones((L, 1, H), jnp.float32)
    p['ln1_b'] = jnp.zeros((L, 1, H), jnp.float32)
    p['ln2_g'] = jnp.ones((L, 1, H), jnp.float32)
    p['ln2_b'] = jnp.zeros((L, 1, H), jnp.float32)

    # 13 heads of 4 classes + 1 head of 2 classes (padded to 4 with zero weight / -1e30 f32 bias),
    # plus dummy tasks up to NUM_TASKS_PAD.  Stored CLASS-MAJOR: column index = c*NUM_TASKS_PAD + t.
    hkeys = jax.random.split(keys[9], 2 * NUM_TASKS)
    w_list, b_list = [], []
    for i in range(NUM_TASKS):
        n_cls = 2 if i == NUM_TASKS - 1 else 4
        w = nrm(hkeys[2 * i], (n_cls, HIDDEN))
        b = nrm(hkeys[2 * i + 1], (n_cls,))
        if n_cls < CLASSES_PAD:
            w = jnp.concatenate([w, jnp.zeros((CLASSES_PAD - n_cls, HIDDEN), jnp.float32)], 0)
            b = jnp.concatenate([b, jnp.full((CLASSES_PAD - n_cls,), -1e30, jnp.float32)], 0)
        w_list.append(w)
        b_list.append(b)
    for _ in range(NUM_TASKS_PAD - NUM_TASKS):
        w_list.append(jnp.zeros((CLASSES_PAD, HIDDEN), jnp.float32))
        b_list.append(jnp.zeros((CLASSES_PAD,), jnp.float32))
    W = jnp.stack(w_list, 0)                   # (NTP, 4, H)
    Bv = jnp.stack(b_list, 0)                  # (NTP, 4)
    p['heads_w'] = (jnp.transpose(W, (1, 0, 2))
                    .reshape(CLASSES_PAD * NUM_TASKS_PAD, HIDDEN).T
                    .astype(jnp.bfloat16))     # (H, 4*NTP), column = c*NTP + t
    p['heads_b'] = jnp.transpose(Bv, (1, 0)).reshape(1, CLASSES_PAD * NUM_TASKS_PAD)  # f32
    return p


# ------------------------------ main -----------------------------------------
if __name__ == "__main__":
    key = jax.random.PRNGKey(0)
    pkey, ikey = jax.random.split(key)
    params = make_params(pkey)

    # synthetic "tokenized reports": CLS id = 1 at position 0, random ids elsewhere
    body = jax.random.randint(ikey, (BATCH, SEQ - 1), 2, VOCAB, dtype=jnp.int32)
    input_ids = jnp.concatenate([jnp.ones((BATCH, 1), jnp.int32), body], axis=1)
    attention_mask = jnp.array(
        [[1, 1, 1, 1, 1, 1, 1, 1],
         [1, 1, 1, 1, 1, 0, 0, 0]], dtype=jnp.int32)

    preds = chexbert_forward(input_ids, attention_mask, params)
    preds = jax.block_until_ready(preds)
    assert preds.shape == (BATCH, NUM_TASKS) and preds.dtype == jnp.int32
    # last head only has 2 real classes -> its prediction must be in {0, 1}
    assert int(jnp.max(preds[:, -1])) <= 1
    print("KERNEL_OK")
</pallas_src>

<mosaic_0001>
module attributes {stable_mosaic.version = 11 : i64} {
  func.func @fused_chexbert_kernel(%arg0: i32, %arg1: i32, %arg2: memref<1x8x32xf32, #tpu.memory_space<vmem>>, %arg3: memref<1x1x8xf32, #tpu.memory_space<vmem>>, %arg4: memref<1x32xf32, #tpu.memory_space<vmem>>, %arg5: memref<1x32xf32, #tpu.memory_space<vmem>>, %arg6: memref<1x32x32xbf16, #tpu.memory_space<vmem>>, %arg7: memref<1x1x32xf32, #tpu.memory_space<vmem>>, %arg8: memref<1x32x32xbf16, #tpu.memory_space<vmem>>, %arg9: memref<1x1x32xf32, #tpu.memory_space<vmem>>, %arg10: memref<1x32x32xbf16, #tpu.memory_space<vmem>>, %arg11: memref<1x1x32xf32, #tpu.memory_space<vmem>>, %arg12: memref<1x32x32xbf16, #tpu.memory_space<vmem>>, %arg13: memref<1x1x32xf32, #tpu.memory_space<vmem>>, %arg14: memref<1x1x32xf32, #tpu.memory_space<vmem>>, %arg15: memref<1x1x32xf32, #tpu.memory_space<vmem>>, %arg16: memref<1x32x64xbf16, #tpu.memory_space<vmem>>, %arg17: memref<1x1x64xf32, #tpu.memory_space<vmem>>, %arg18: memref<1x64x32xbf16, #tpu.memory_space<vmem>>, %arg19: memref<1x1x32xf32, #tpu.memory_space<vmem>>, %arg20: memref<1x1x32xf32, #tpu.memory_space<vmem>>, %arg21: memref<1x1x32xf32, #tpu.memory_space<vmem>>, %arg22: memref<32x64xbf16, #tpu.memory_space<vmem>>, %arg23: memref<1x64xf32, #tpu.memory_space<vmem>>, %arg24: memref<1x1x16xi32, #tpu.memory_space<vmem>>, %arg25: memref<8x32xf32, #tpu.memory_space<vmem>>, %arg26: memref<8x32xf32, #tpu.memory_space<vmem>>) attributes {dimension_semantics = [#tpu.dimension_semantics<parallel>, #tpu.dimension_semantics<arbitrary>], iteration_bounds = array<i64: 2, 2>, scalar_prefetch = 0 : i64, scratch_operands = 2 : i64, tpu.core_type = #tpu.core_type<tc>, window_params = [{transform_indices = @transform_0, window_bounds = array<i64: 1, 8, 32>}, {transform_indices = @transform_1, window_bounds = array<i64: 1, 1, 8>}, {pipeline_mode = #tpu.pipeline_mode<synchronous>, transform_indices = @transform_2, window_bounds = array<i64: 1, 32>}, {pipeline_mode = #tpu.pipeline_mode<synchronous>, transform_indices = @transform_3, window_bounds = array<i64: 1, 32>}, {transform_indices = @transform_4, window_bounds = array<i64: 1, 32, 32>}, {transform_indices = @transform_5, window_bounds = array<i64: 1, 1, 32>}, {transform_indices = @transform_6, window_bounds = array<i64: 1, 32, 32>}, {transform_indices = @transform_7, window_bounds = array<i64: 1, 1, 32>}, {transform_indices = @transform_8, window_bounds = array<i64: 1, 32, 32>}, {transform_indices = @transform_9, window_bounds = array<i64: 1, 1, 32>}, {transform_indices = @transform_10, window_bounds = array<i64: 1, 32, 32>}, {transform_indices = @transform_11, window_bounds = array<i64: 1, 1, 32>}, {transform_indices = @transform_12, window_bounds = array<i64: 1, 1, 32>}, {transform_indices = @transform_13, window_bounds = array<i64: 1, 1, 32>}, {transform_indices = @transform_14, window_bounds = array<i64: 1, 32, 64>}, {transform_indices = @transform_15, window_bounds = array<i64: 1, 1, 64>}, {transform_indices = @transform_16, window_bounds = array<i64: 1, 64, 32>}, {transform_indices = @transform_17, window_bounds = array<i64: 1, 1, 32>}, {transform_indices = @transform_18, window_bounds = array<i64: 1, 1, 32>}, {transform_indices = @transform_19, window_bounds = array<i64: 1, 1, 32>}, {pipeline_mode = #tpu.pipeline_mode<synchronous>, transform_indices = @transform_20, window_bounds = array<i64: 32, 64>}, {pipeline_mode = #tpu.pipeline_mode<synchronous>, transform_indices = @transform_21, window_bounds = array<i64: 1, 64>}, {transform_indices = @transform_22, window_bounds = array<i64: 1, 1, 16>}]} {
    %c0_i32 = arith.constant 0 : i32
    %0 = arith.cmpi eq, %arg1, %c0_i32 : i32
    %1 = arith.extui %0 : i1 to i32
    %c0_i32_0 = arith.constant 0 : i32
    %2 = arith.cmpi ne, %1, %c0_i32_0 : i32
    scf.if %2 {
      %c0_102 = arith.constant 0 : index
      %c0_103 = arith.constant 0 : index
      %c0_104 = arith.constant 0 : index
      %220 = vector.load %arg2[%c0_102, %c0_103, %c0_104] : memref<1x8x32xf32, #tpu.memory_space<vmem>>, vector<1x8x32xf32>
      %221 = vector.shape_cast %220 : vector<1x8x32xf32> to vector<8x32xf32>
      %c0_105 = arith.constant 0 : index
      %c0_106 = arith.constant 0 : index
      %222 = vector.load %arg4[%c0_105, %c0_106] : memref<1x32xf32, #tpu.memory_space<vmem>>, vector<1x32xf32>
      %c0_107 = arith.constant 0 : index
      %c0_108 = arith.constant 0 : index
      %223 = vector.load %arg5[%c0_107, %c0_108] : memref<1x32xf32, #tpu.memory_space<vmem>>, vector<1x32xf32>
      %cst_109 = arith.constant dense<0.000000e+00> : vector<8xf32>
      %224 = vector.multi_reduction <add>, %221, %cst_109 [1] : vector<8x32xf32> to vector<8xf32>
      %225 = vector.shape_cast %224 : vector<8xf32> to vector<8x1xf32>
      %cst_110 = arith.constant 3.200000e+01 : f32
      %226 = vector.broadcast %cst_110 : f32 to vector<8x1xf32>
      %227 = arith.divf %225, %226 : vector<8x1xf32>
      %228 = vector.broadcast %227 : vector<8x1xf32> to vector<8x32xf32>
      %229 = arith.subf %221, %228 : vector<8x32xf32>
      %230 = arith.mulf %229, %229 : vector<8x32xf32>
      %cst_111 = arith.constant dense<0.000000e+00> : vector<8xf32>
      %231 = vector.multi_reduction <add>, %230, %cst_111 [1] : vector<8x32xf32> to vector<8xf32>
      %232 = vector.shape_cast %231 : vector<8xf32> to vector<8x1xf32>
      %cst_112 = arith.constant 3.200000e+01 : f32
      %233 = vector.broadcast %cst_112 : f32 to vector<8x1xf32>
      %234 = arith.divf %232, %233 : vector<8x1xf32>
      %235 = vector.broadcast %227 : vector<8x1xf32> to vector<8x32xf32>
      %236 = arith.subf %221, %235 : vector<8x32xf32>
      %cst_113 = arith.constant 9.99999996E-13 : f32
      %237 = vector.broadcast %cst_113 : f32 to vector<8x1xf32>
      %238 = arith.addf %234, %237 : vector<8x1xf32>
      %239 = math.rsqrt %238 : vector<8x1xf32>
      %240 = vector.broadcast %239 : vector<8x1xf32> to vector<8x32xf32>
      %241 = arith.mulf %236, %240 : vector<8x32xf32>
      %242 = vector.broadcast %222 : vector<1x32xf32> to vector<8x32xf32>
      %243 = arith.mulf %241, %242 : vector<8x32xf32>
      %244 = vector.broadcast %223 : vector<1x32xf32> to vector<8x32xf32>
      %245 = arith.addf %243, %244 : vector<8x32xf32>
      %c0_114 = arith.constant 0 : index
      %c0_115 = arith.constant 0 : index
      %246 = vector.load %arg25[%c0_114, %c0_115] : memref<8x32xf32, #tpu.memory_space<vmem>>, vector<8x32xf32>
      tpu.vector_store %arg25[%c0_114, %c0_115], %245 {strides = array<i32>} : memref<8x32xf32, #tpu.memory_space<vmem>>, vector<8x32xf32>,
    } else {
    }
    %c0 = arith.constant 0 : index
    %c0_1 = arith.constant 0 : index
    %3 = vector.load %arg25[%c0, %c0_1] : memref<8x32xf32, #tpu.memory_space<vmem>>, vector<8x32xf32>
    %4 = arith.truncf %3 : vector<8x32xf32> to vector<8x32xbf16>
    %c0_2 = arith.constant 0 : index
    %c0_3 = arith.constant 0 : index
    %c0_4 = arith.constant 0 : index
    %5 = vector.load %arg6[%c0_2, %c0_3, %c0_4] : memref<1x32x32xbf16, #tpu.memory_space<vmem>>, vector<1x32x32xbf16>
    %6 = vector.shape_cast %5 : vector<1x32x32xbf16> to vector<32x32xbf16>
    %cst = arith.constant dense<0.000000e+00> : vector<8x32xf32>
    %7 = tpu.matmul %4, %6, %cst {dimension_numbers = #tpu.dot_dimension_numbers<[1], [0], [0], [1], [0, 0, 1, 1], [], []>} : vector<8x32xbf16>, vector<32x32xbf16>, vector<8x32xf32> -> vector<8x32xf32>
    %c0_5 = arith.constant 0 : index
    %c0_6 = arith.constant 0 : index
    %c0_7 = arith.constant 0 : index
    %8 = vector.load %arg7[%c0_5, %c0_6, %c0_7] : memref<1x1x32xf32, #tpu.memory_space<vmem>>, vector<1x1x32xf32>
    %9 = vector.shape_cast %8 : vector<1x1x32xf32> to vector<1x32xf32>
    %10 = vector.broadcast %9 : vector<1x32xf32> to vector<8x32xf32>
    %11 = arith.addf %7, %10 : vector<8x32xf32>
    %c0_8 = arith.constant 0 : index
    %c0_9 = arith.constant 0 : index
    %c0_10 = arith.constant 0 : index
    %12 = vector.load %arg8[%c0_8, %c0_9, %c0_10] : memref<1x32x32xbf16, #tpu.memory_space<vmem>>, vector<1x32x32xbf16>
    %13 = vector.shape_cast %12 : vector<1x32x32xbf16> to vector<32x32xbf16>
    %cst_11 = arith.constant dense<0.000000e+00> : vector<8x32xf32>
    %14 = tpu.matmul %4, %13, %cst_11 {dimension_numbers = #tpu.dot_dimension_numbers<[1], [0], [0], [1], [0, 0, 1, 1], [], []>} : vector<8x32xbf16>, vector<32x32xbf16>, vector<8x32xf32> -> vector<8x32xf32>
    %c0_12 = arith.constant 0 : index
    %c0_13 = arith.constant 0 : index
    %c0_14 = arith.constant 0 : index
    %15 = vector.load %arg9[%c0_12, %c0_13, %c0_14] : memref<1x1x32xf32, #tpu.memory_space<vmem>>, vector<1x1x32xf32>
    %16 = vector.shape_cast %15 : vector<1x1x32xf32> to vector<1x32xf32>
    %17 = vector.broadcast %16 : vector<1x32xf32> to vector<8x32xf32>
    %18 = arith.addf %14, %17 : vector<8x32xf32>
    %c0_15 = arith.constant 0 : index
    %c0_16 = arith.constant 0 : index
    %c0_17 = arith.constant 0 : index
    %19 = vector.load %arg10[%c0_15, %c0_16, %c0_17] : memref<1x32x32xbf16, #tpu.memory_space<vmem>>, vector<1x32x32xbf16>
    %20 = vector.shape_cast %19 : vector<1x32x32xbf16> to vector<32x32xbf16>
    %cst_18 = arith.constant dense<0.000000e+00> : vector<8x32xf32>
    %21 = tpu.matmul %4, %20, %cst_18 {dimension_numbers = #tpu.dot_dimension_numbers<[1], [0], [0], [1], [0, 0, 1, 1], [], []>} : vector<8x32xbf16>, vector<32x32xbf16>, vector<8x32xf32> -> vector<8x32xf32>
    %c0_19 = arith.constant 0 : index
    %c0_20 = arith.constant 0 : index
    %c0_21 = arith.constant 0 : index
    %22 = vector.load %arg11[%c0_19, %c0_20, %c0_21] : memref<1x1x32xf32, #tpu.memory_space<vmem>>, vector<1x1x32xf32>
    %23 = vector.shape_cast %22 : vector<1x1x32xf32> to vector<1x32xf32>
    %24 = vector.broadcast %23 : vector<1x32xf32> to vector<8x32xf32>
    %25 = arith.addf %21, %24 : vector<8x32xf32>
    %c0_22 = arith.constant 0 : index
    %c0_23 = arith.constant 0 : index
    %c0_24 = arith.constant 0 : index
    %26 = vector.load %arg3[%c0_22, %c0_23, %c0_24] : memref<1x1x8xf32, #tpu.memory_space<vmem>>, vector<1x1x8xf32>
    %27 = vector.shape_cast %26 : vector<1x1x8xf32> to vector<1x8xf32>
    %28 = vector.extract_strided_slice %11 {offsets = [0, 0], sizes = [8, 8], strides = [1, 1]} : vector<8x32xf32> to vector<8x8xf32>
    %29 = arith.truncf %28 : vector<8x8xf32> to vector<8x8xbf16>
    %30 = vector.extract_strided_slice %18 {offsets = [0, 0], sizes = [8, 8], strides = [1, 1]} : vector<8x32xf32> to vector<8x8xf32>
    %31 = arith.truncf %30 : vector<8x8xf32> to vector<8x8xbf16>
    %32 = vector.extract_strided_slice %25 {offsets = [0, 0], sizes = [8, 8], strides = [1, 1]} : vector<8x32xf32> to vector<8x8xf32>
    %33 = arith.truncf %32 : vector<8x8xf32> to vector<8x8xbf16>
    "tpu.trace_start"() <{level = 10 : i32, message = "qd,kd->qk"}> : () -> ()
    %cst_25 = arith.constant dense<0.000000e+00> : vector<8x8xf32>
    %34 = tpu.matmul %29, %31, %cst_25 {dimension_numbers = #tpu.dot_dimension_numbers<[1], [1], [0], [0], [0, 0, 1, 0], [], []>} : vector<8x8xbf16>, vector<8x8xbf16>, vector<8x8xf32> -> vector<8x8xf32>
    "tpu.trace_stop"() : () -> ()
    %cst_26 = arith.constant 0.353553385 : f32
    %35 = vector.broadcast %cst_26 : f32 to vector<8x8xf32>
    %36 = arith.mulf %34, %35 : vector<8x8xf32>
    %37 = vector.broadcast %27 : vector<1x8xf32> to vector<8x8xf32>
    %38 = arith.addf %36, %37 : vector<8x8xf32>
    %cst_27 = arith.constant dense<0xFF800000> : vector<8xf32>
    %39 = vector.multi_reduction <maximumf>, %38, %cst_27 [1] : vector<8x8xf32> to vector<8xf32>
    %40 = vector.shape_cast %39 : vector<8xf32> to vector<8x1xf32>
    %41 = vector.broadcast %40 : vector<8x1xf32> to vector<8x8xf32>
    %42 = arith.subf %38, %41 : vector<8x8xf32>
    %43 = math.exp %42 : vector<8x8xf32>
    %cst_28 = arith.constant dense<0.000000e+00> : vector<8xf32>
    %44 = vector.multi_reduction <add>, %43, %cst_28 [1] : vector<8x8xf32> to vector<8xf32>
    %45 = vector.shape_cast %44 : vector<8xf32> to vector<8x1xf32>
    %46 = tpu.reciprocal %45 {approx = true} : vector<8x1xf32> -> vector<8x1xf32>
    %47 = vector.broadcast %46 : vector<8x1xf32> to vector<8x8xf32>
    %48 = arith.mulf %43, %47 : vector<8x8xf32>
    %49 = arith.truncf %48 : vector<8x8xf32> to vector<8x8xbf16>
    %cst_29 = arith.constant dense<0.000000e+00> : vector<8x8xf32>
    %50 = tpu.matmul %49, %33, %cst_29 {dimension_numbers = #tpu.dot_dimension_numbers<[1], [0], [0], [1], [0, 0, 1, 1], [], []>} : vector<8x8xbf16>, vector<8x8xbf16>, vector<8x8xf32> -> vector<8x8xf32>
    %c0_30 = arith.constant 0 : index
    %c0_31 = arith.constant 0 : index
    %51 = vector.load %arg26[%c0_30, %c0_31] : memref<8x32xf32, #tpu.memory_space<vmem>>, vector<8x8xf32>
    tpu.vector_store %arg26[%c0_30, %c0_31], %50 {strides = array<i32>} : memref<8x32xf32, #tpu.memory_space<vmem>>, vector<8x8xf32>,
    %52 = vector.extract_strided_slice %11 {offsets = [0, 8], sizes = [8, 8], strides = [1, 1]} : vector<8x32xf32> to vector<8x8xf32>
    %53 = arith.truncf %52 : vector<8x8xf32> to vector<8x8xbf16>
    %54 = vector.extract_strided_slice %18 {offsets = [0, 8], sizes = [8, 8], strides = [1, 1]} : vector<8x32xf32> to vector<8x8xf32>
    %55 = arith.truncf %54 : vector<8x8xf32> to vector<8x8xbf16>
    %56 = vector.extract_strided_slice %25 {offsets = [0, 8], sizes = [8, 8], strides = [1, 1]} : vector<8x32xf32> to vector<8x8xf32>
    %57 = arith.truncf %56 : vector<8x8xf32> to vector<8x8xbf16>
    "tpu.trace_start"() <{level = 10 : i32, message = "qd,kd->qk"}> : () -> ()
    %cst_32 = arith.constant dense<0.000000e+00> : vector<8x8xf32>
    %58 = tpu.matmul %53, %55, %cst_32 {dimension_numbers = #tpu.dot_dimension_numbers<[1], [1], [0], [0], [0, 0, 1, 0], [], []>} : vector<8x8xbf16>, vector<8x8xbf16>, vector<8x8xf32> -> vector<8x8xf32>
    "tpu.trace_stop"() : () -> ()
    %cst_33 = arith.constant 0.353553385 : f32
    %59 = vector.broadcast %cst_33 : f32 to vector<8x8xf32>
    %60 = arith.mulf %58, %59 : vector<8x8xf32>
    %61 = vector.broadcast %27 : vector<1x8xf32> to vector<8x8xf32>
    %62 = arith.addf %60, %61 : vector<8x8xf32>
    %cst_34 = arith.constant dense<0xFF800000> : vector<8xf32>
    %63 = vector.multi_reduction <maximumf>, %62, %cst_34 [1] : vector<8x8xf32> to vector<8xf32>
    %64 = vector.shape_cast %63 : vector<8xf32> to vector<8x1xf32>
    %65 = vector.broadcast %64 : vector<8x1xf32> to vector<8x8xf32>
    %66 = arith.subf %62, %65 : vector<8x8xf32>
    %67 = math.exp %66 : vector<8x8xf32>
    %cst_35 = arith.constant dense<0.000000e+00> : vector<8xf32>
    %68 = vector.multi_reduction <add>, %67, %cst_35 [1] : vector<8x8xf32> to vector<8xf32>
    %69 = vector.shape_cast %68 : vector<8xf32> to vector<8x1xf32>
    %70 = tpu.reciprocal %69 {approx = true} : vector<8x1xf32> -> vector<8x1xf32>
    %71 = vector.broadcast %70 : vector<8x1xf32> to vector<8x8xf32>
    %72 = arith.mulf %67, %71 : vector<8x8xf32>
    %73 = arith.truncf %72 : vector<8x8xf32> to vector<8x8xbf16>
    %cst_36 = arith.constant dense<0.000000e+00> : vector<8x8xf32>
    %74 = tpu.matmul %73, %57, %cst_36 {dimension_numbers = #tpu.dot_dimension_numbers<[1], [0], [0], [1], [0, 0, 1, 1], [], []>} : vector<8x8xbf16>, vector<8x8xbf16>, vector<8x8xf32> -> vector<8x8xf32>
    %c0_37 = arith.constant 0 : index
    %c8 = arith.constant 8 : index
    %75 = vector.load %arg26[%c0_37, %c8] : memref<8x32xf32, #tpu.memory_space<vmem>>, vector<8x8xf32>
    tpu.vector_store %arg26[%c0_37, %c8], %74 {strides = array<i32>} : memref<8x32xf32, #tpu.memory_space<vmem>>, vector<8x8xf32>,
    %76 = vector.extract_strided_slice %11 {offsets = [0, 16], sizes = [8, 8], strides = [1, 1]} : vector<8x32xf32> to vector<8x8xf32>
    %77 = arith.truncf %76 : vector<8x8xf32> to vector<8x8xbf16>
    %78 = vector.extract_strided_slice %18 {offsets = [0, 16], sizes = [8, 8], strides = [1, 1]} : vector<8x32xf32> to vector<8x8xf32>
    %79 = arith.truncf %78 : vector<8x8xf32> to vector<8x8xbf16>
    %80 = vector.extract_strided_slice %25 {offsets = [0, 16], sizes = [8, 8], strides = [1, 1]} : vector<8x32xf32> to vector<8x8xf32>
    %81 = arith.truncf %80 : vector<8x8xf32> to vector<8x8xbf16>
    "tpu.trace_start"() <{level = 10 : i32, message = "qd,kd->qk"}> : () -> ()
    %cst_38 = arith.constant dense<0.000000e+00> : vector<8x8xf32>
    %82 = tpu.matmul %77, %79, %cst_38 {dimension_numbers = #tpu.dot_dimension_numbers<[1], [1], [0], [0], [0, 0, 1, 0], [], []>} : vector<8x8xbf16>, vector<8x8xbf16>, vector<8x8xf32> -> vector<8x8xf32>
    "tpu.trace_stop"() : () -> ()
    %cst_39 = arith.constant 0.353553385 : f32
    %83 = vector.broadcast %cst_39 : f32 to vector<8x8xf32>
    %84 = arith.mulf %82, %83 : vector<8x8xf32>
    %85 = vector.broadcast %27 : vector<1x8xf32> to vector<8x8xf32>
    %86 = arith.addf %84, %85 : vector<8x8xf32>
    %cst_40 = arith.constant dense<0xFF800000> : vector<8xf32>
    %87 = vector.multi_reduction <maximumf>, %86, %cst_40 [1] : vector<8x8xf32> to vector<8xf32>
    %88 = vector.shape_cast %87 : vector<8xf32> to vector<8x1xf32>
    %89 = vector.broadcast %88 : vector<8x1xf32> to vector<8x8xf32>
    %90 = arith.subf %86, %89 : vector<8x8xf32>
    %91 = math.exp %90 : vector<8x8xf32>
    %cst_41 = arith.constant dense<0.000000e+00> : vector<8xf32>
    %92 = vector.multi_reduction <add>, %91, %cst_41 [1] : vector<8x8xf32> to vector<8xf32>
    %93 = vector.shape_cast %92 : vector<8xf32> to vector<8x1xf32>
    %94 = tpu.reciprocal %93 {approx = true} : vector<8x1xf32> -> vector<8x1xf32>
    %95 = vector.broadcast %94 : vector<8x1xf32> to vector<8x8xf32>
    %96 = arith.mulf %91, %95 : vector<8x8xf32>
    %97 = arith.truncf %96 : vector<8x8xf32> to vector<8x8xbf16>
    %cst_42 = arith.constant dense<0.000000e+00> : vector<8x8xf32>
    %98 = tpu.matmul %97, %81, %cst_42 {dimension_numbers = #tpu.dot_dimension_numbers<[1], [0], [0], [1], [0, 0, 1, 1], [], []>} : vector<8x8xbf16>, vector<8x8xbf16>, vector<8x8xf32> -> vector<8x8xf32>
    %c0_43 = arith.constant 0 : index
    %c16 = arith.constant 16 : index
    %99 = vector.load %arg26[%c0_43, %c16] : memref<8x32xf32, #tpu.memory_space<vmem>>, vector<8x8xf32>
    tpu.vector_store %arg26[%c0_43, %c16], %98 {strides = array<i32>} : memref<8x32xf32, #tpu.memory_space<vmem>>, vector<8x8xf32>,
    %100 = vector.extract_strided_slice %11 {offsets = [0, 24], sizes = [8, 8], strides = [1, 1]} : vector<8x32xf32> to vector<8x8xf32>
    %101 = arith.truncf %100 : vector<8x8xf32> to vector<8x8xbf16>
    %102 = vector.extract_strided_slice %18 {offsets = [0, 24], sizes = [8, 8], strides = [1, 1]} : vector<8x32xf32> to vector<8x8xf32>
    %103 = arith.truncf %102 : vector<8x8xf32> to vector<8x8xbf16>
    %104 = vector.extract_strided_slice %25 {offsets = [0, 24], sizes = [8, 8], strides = [1, 1]} : vector<8x32xf32> to vector<8x8xf32>
    %105 = arith.truncf %104 : vector<8x8xf32> to vector<8x8xbf16>
    "tpu.trace_start"() <{level = 10 : i32, message = "qd,kd->qk"}> : () -> ()
    %cst_44 = arith.constant dense<0.000000e+00> : vector<8x8xf32>
    %106 = tpu.matmul %101, %103, %cst_44 {dimension_numbers = #tpu.dot_dimension_numbers<[1], [1], [0], [0], [0, 0, 1, 0], [], []>} : vector<8x8xbf16>, vector<8x8xbf16>, vector<8x8xf32> -> vector<8x8xf32>
    "tpu.trace_stop"() : () -> ()
    %cst_45 = arith.constant 0.353553385 : f32
    %107 = vector.broadcast %cst_45 : f32 to vector<8x8xf32>
    %108 = arith.mulf %106, %107 : vector<8x8xf32>
    %109 = vector.broadcast %27 : vector<1x8xf32> to vector<8x8xf32>
    %110 = arith.addf %108, %109 : vector<8x8xf32>
    %cst_46 = arith.constant dense<0xFF800000> : vector<8xf32>
    %111 = vector.multi_reduction <maximumf>, %110, %cst_46 [1] : vector<8x8xf32> to vector<8xf32>
    %112 = vector.shape_cast %111 : vector<8xf32> to vector<8x1xf32>
    %113 = vector.broadcast %112 : vector<8x1xf32> to vector<8x8xf32>
    %114 = arith.subf %110, %113 : vector<8x8xf32>
    %115 = math.exp %114 : vector<8x8xf32>
    %cst_47 = arith.constant dense<0.000000e+00> : vector<8xf32>
    %116 = vector.multi_reduction <add>, %115, %cst_47 [1] : vector<8x8xf32> to vector<8xf32>
    %117 = vector.shape_cast %116 : vector<8xf32> to vector<8x1xf32>
    %118 = tpu.reciprocal %117 {approx = true} : vector<8x1xf32> -> vector<8x1xf32>
    %119 = vector.broadcast %118 : vector<8x1xf32> to vector<8x8xf32>
    %120 = arith.mulf %115, %119 : vector<8x8xf32>
    %121 = arith.truncf %120 : vector<8x8xf32> to vector<8x8xbf16>
    %cst_48 = arith.constant dense<0.000000e+00> : vector<8x8xf32>
    %122 = tpu.matmul %121, %105, %cst_48 {dimension_numbers = #tpu.dot_dimension_numbers<[1], [0], [0], [1], [0, 0, 1, 1], [], []>} : vector<8x8xbf16>, vector<8x8xbf16>, vector<8x8xf32> -> vector<8x8xf32>
    %c0_49 = arith.constant 0 : index
    %c24 = arith.constant 24 : index
    %123 = vector.load %arg26[%c0_49, %c24] : memref<8x32xf32, #tpu.memory_space<vmem>>, vector<8x8xf32>
    tpu.vector_store %arg26[%c0_49, %c24], %122 {strides = array<i32>} : memref<8x32xf32, #tpu.memory_space<vmem>>, vector<8x8xf32>,
    %c0_50 = arith.constant 0 : index
    %c0_51 = arith.constant 0 : index
    %124 = vector.load %arg26[%c0_50, %c0_51] : memref<8x32xf32, #tpu.memory_space<vmem>>, vector<8x32xf32>
    %125 = arith.truncf %124 : vector<8x32xf32> to vector<8x32xbf16>
    %c0_52 = arith.constant 0 : index
    %c0_53 = arith.constant 0 : index
    %c0_54 = arith.constant 0 : index
    %126 = vector.load %arg12[%c0_52, %c0_53, %c0_54] : memref<1x32x32xbf16, #tpu.memory_space<vmem>>, vector<1x32x32xbf16>
    %127 = vector.shape_cast %126 : vector<1x32x32xbf16> to vector<32x32xbf16>
    %cst_55 = arith.constant dense<0.000000e+00> : vector<8x32xf32>
    %128 = tpu.matmul %125, %127, %cst_55 {dimension_numbers = #tpu.dot_dimension_numbers<[1], [0], [0], [1], [0, 0, 1, 1], [], []>} : vector<8x32xbf16>, vector<32x32xbf16>, vector<8x32xf32> -> vector<8x32xf32>
    %c0_56 = arith.constant 0 : index
    %c0_57 = arith.constant 0 : index
    %c0_58 = arith.constant 0 : index
    %129 = vector.load %arg13[%c0_56, %c0_57, %c0_58] : memref<1x1x32xf32, #tpu.memory_space<vmem>>, vector<1x1x32xf32>
    %130 = vector.shape_cast %129 : vector<1x1x32xf32> to vector<1x32xf32>
    %131 = vector.broadcast %130 : vector<1x32xf32> to vector<8x32xf32>
    %132 = arith.addf %128, %131 : vector<8x32xf32>
    %133 = arith.addf %3, %132 : vector<8x32xf32>
    %c0_59 = arith.constant 0 : index
    %c0_60 = arith.constant 0 : index
    %c0_61 = arith.constant 0 : index
    %134 = vector.load %arg14[%c0_59, %c0_60, %c0_61] : memref<1x1x32xf32, #tpu.memory_space<vmem>>, vector<1x1x32xf32>
    %135 = vector.shape_cast %134 : vector<1x1x32xf32> to vector<1x32xf32>
    %c0_62 = arith.constant 0 : index
    %c0_63 = arith.constant 0 : index
    %c0_64 = arith.constant 0 : index
    %136 = vector.load %arg15[%c0_62, %c0_63, %c0_64] : memref<1x1x32xf32, #tpu.memory_space<vmem>>, vector<1x1x32xf32>
    %137 = vector.shape_cast %136 : vector<1x1x32xf32> to vector<1x32xf32>
    %cst_65 = arith.constant dense<0.000000e+00> : vector<8xf32>
    %138 = vector.multi_reduction <add>, %133, %cst_65 [1] : vector<8x32xf32> to vector<8xf32>
    %139 = vector.shape_cast %138 : vector<8xf32> to vector<8x1xf32>
    %cst_66 = arith.constant 3.200000e+01 : f32
    %140 = vector.broadcast %cst_66 : f32 to vector<8x1xf32>
    %141 = arith.divf %139, %140 : vector<8x1xf32>
    %142 = vector.broadcast %141 : vector<8x1xf32> to vector<8x32xf32>
    %143 = arith.subf %133, %142 : vector<8x32xf32>
    %144 = arith.mulf %143, %143 : vector<8x32xf32>
    %cst_67 = arith.constant dense<0.000000e+00> : vector<8xf32>
    %145 = vector.multi_reduction <add>, %144, %cst_67 [1] : vector<8x32xf32> to vector<8xf32>
    %146 = vector.shape_cast %145 : vector<8xf32> to vector<8x1xf32>
    %cst_68 = arith.constant 3.200000e+01 : f32
    %147 = vector.broadcast %cst_68 : f32 to vector<8x1xf32>
    %148 = arith.divf %146, %147 : vector<8x1xf32>
    %149 = vector.broadcast %141 : vector<8x1xf32> to vector<8x32xf32>
    %150 = arith.subf %133, %149 : vector<8x32xf32>
    %cst_69 = arith.constant 9.99999996E-13 : f32
    %151 = vector.broadcast %cst_69 : f32 to vector<8x1xf32>
    %152 = arith.addf %148, %151 : vector<8x1xf32>
    %153 = math.rsqrt %152 : vector<8x1xf32>
    %154 = vector.broadcast %153 : vector<8x1xf32> to vector<8x32xf32>
    %155 = arith.mulf %150, %154 : vector<8x32xf32>
    %156 = vector.broadcast %135 : vector<1x32xf32> to vector<8x32xf32>
    %157 = arith.mulf %155, %156 : vector<8x32xf32>
    %158 = vector.broadcast %137 : vector<1x32xf32> to vector<8x32xf32>
    %159 = arith.addf %157, %158 : vector<8x32xf32>
    %160 = arith.truncf %159 : vector<8x32xf32> to vector<8x32xbf16>
    %c0_70 = arith.constant 0 : index
    %c0_71 = arith.constant 0 : index
    %c0_72 = arith.constant 0 : index
    %161 = vector.load %arg16[%c0_70, %c0_71, %c0_72] : memref<1x32x64xbf16, #tpu.memory_space<vmem>>, vector<1x32x64xbf16>
    %162 = vector.shape_cast %161 : vector<1x32x64xbf16> to vector<32x64xbf16>
    %cst_73 = arith.constant dense<0.000000e+00> : vector<8x64xf32>
    %163 = tpu.matmul %160, %162, %cst_73 {dimension_numbers = #tpu.dot_dimension_numbers<[1], [0], [0], [1], [0, 0, 1, 1], [], []>} : vector<8x32xbf16>, vector<32x64xbf16>, vector<8x64xf32> -> vector<8x64xf32>
    %c0_74 = arith.constant 0 : index
    %c0_75 = arith.constant 0 : index
    %c0_76 = arith.constant 0 : index
    %164 = vector.load %arg17[%c0_74, %c0_75, %c0_76] : memref<1x1x64xf32, #tpu.memory_space<vmem>>, vector<1x1x64xf32>
    %165 = vector.shape_cast %164 : vector<1x1x64xf32> to vector<1x64xf32>
    %166 = vector.broadcast %165 : vector<1x64xf32> to vector<8x64xf32>
    %167 = arith.addf %163, %166 : vector<8x64xf32>
    %168 = arith.mulf %167, %167 : vector<8x64xf32>
    %169 = arith.mulf %167, %168 : vector<8x64xf32>
    %cst_77 = arith.constant 4.471500e-02 : f32
    %170 = vector.broadcast %cst_77 : f32 to vector<8x64xf32>
    %171 = arith.mulf %170, %169 : vector<8x64xf32>
    %172 = arith.addf %167, %171 : vector<8x64xf32>
    %cst_78 = arith.constant 0.797884583 : f32
    %173 = vector.broadcast %cst_78 : f32 to vector<8x64xf32>
    %174 = arith.mulf %173, %172 : vector<8x64xf32>
    %175 = math.tanh %174 : vector<8x64xf32>
    %cst_79 = arith.constant 1.000000e+00 : f32
    %176 = vector.broadcast %cst_79 : f32 to vector<8x64xf32>
    %177 = arith.addf %176, %175 : vector<8x64xf32>
    %cst_80 = arith.constant 5.000000e-01 : f32
    %178 = vector.broadcast %cst_80 : f32 to vector<8x64xf32>
    %179 = arith.mulf %178, %177 : vector<8x64xf32>
    %180 = arith.mulf %167, %179 : vector<8x64xf32>
    %181 = arith.truncf %180 : vector<8x64xf32> to vector<8x64xbf16>
    %c0_81 = arith.constant 0 : index
    %c0_82 = arith.constant 0 : index
    %c0_83 = arith.constant 0 : index
    %182 = vector.load %arg18[%c0_81, %c0_82, %c0_83] : memref<1x64x32xbf16, #tpu.memory_space<vmem>>, vector<1x64x32xbf16>
    %183 = vector.shape_cast %182 : vector<1x64x32xbf16> to vector<64x32xbf16>
    %cst_84 = arith.constant dense<0.000000e+00> : vector<8x32xf32>
    %184 = tpu.matmul %181, %183, %cst_84 {dimension_numbers = #tpu.dot_dimension_numbers<[1], [0], [0], [1], [0, 0, 1, 1], [], []>} : vector<8x64xbf16>, vector<64x32xbf16>, vector<8x32xf32> -> vector<8x32xf32>
    %c0_85 = arith.constant 0 : index
    %c0_86 = arith.constant 0 : index
    %c0_87 = arith.constant 0 : index
    %185 = vector.load %arg19[%c0_85, %c0_86, %c0_87] : memref<1x1x32xf32, #tpu.memory_space<vmem>>, vector<1x1x32xf32>
    %186 = vector.shape_cast %185 : vector<1x1x32xf32> to vector<1x32xf32>
    %187 = vector.broadcast %186 : vector<1x32xf32> to vector<8x32xf32>
    %188 = arith.addf %184, %187 : vector<8x32xf32>
    %189 = arith.addf %159, %188 : vector<8x32xf32>
    %c0_88 = arith.constant 0 : index
    %c0_89 = arith.constant 0 : index
    %c0_90 = arith.constant 0 : index
    %190 = vector.load %arg20[%c0_88, %c0_89, %c0_90] : memref<1x1x32xf32, #tpu.memory_space<vmem>>, vector<1x1x32xf32>
    %191 = vector.shape_cast %190 : vector<1x1x32xf32> to vector<1x32xf32>
    %c0_91 = arith.constant 0 : index
    %c0_92 = arith.constant 0 : index
    %c0_93 = arith.constant 0 : index
    %192 = vector.load %arg21[%c0_91, %c0_92, %c0_93] : memref<1x1x32xf32, #tpu.memory_space<vmem>>, vector<1x1x32xf32>
    %193 = vector.shape_cast %192 : vector<1x1x32xf32> to vector<1x32xf32>
    %cst_94 = arith.constant dense<0.000000e+00> : vector<8xf32>
    %194 = vector.multi_reduction <add>, %189, %cst_94 [1] : vector<8x32xf32> to vector<8xf32>
    %195 = vector.shape_cast %194 : vector<8xf32> to vector<8x1xf32>
    %cst_95 = arith.constant 3.200000e+01 : f32
    %196 = vector.broadcast %cst_95 : f32 to vector<8x1xf32>
    %197 = arith.divf %195, %196 : vector<8x1xf32>
    %198 = vector.broadcast %197 : vector<8x1xf32> to vector<8x32xf32>
    %199 = arith.subf %189, %198 : vector<8x32xf32>
    %200 = arith.mulf %199, %199 : vector<8x32xf32>
    %cst_96 = arith.constant dense<0.000000e+00> : vector<8xf32>
    %201 = vector.multi_reduction <add>, %200, %cst_96 [1] : vector<8x32xf32> to vector<8xf32>
    %202 = vector.shape_cast %201 : vector<8xf32> to vector<8x1xf32>
    %cst_97 = arith.constant 3.200000e+01 : f32
    %203 = vector.broadcast %cst_97 : f32 to vector<8x1xf32>
    %204 = arith.divf %202, %203 : vector<8x1xf32>
    %205 = vector.broadcast %197 : vector<8x1xf32> to vector<8x32xf32>
    %206 = arith.subf %189, %205 : vector<8x32xf32>
    %cst_98 = arith.constant 9.99999996E-13 : f32
    %207 = vector.broadcast %cst_98 : f32 to vector<8x1xf32>
    %208 = arith.addf %204, %207 : vector<8x1xf32>
    %209 = math.rsqrt %208 : vector<8x1xf32>
    %210 = vector.broadcast %209 : vector<8x1xf32> to vector<8x32xf32>
    %211 = arith.mulf %206, %210 : vector<8x32xf32>
    %212 = vector.broadcast %191 : vector<1x32xf32> to vector<8x32xf32>
    %213 = arith.mulf %211, %212 : vector<8x32xf32>
    %214 = vector.broadcast %193 : vector<1x32xf32> to vector<8x32xf32>
    %215 = arith.addf %213, %214 : vector<8x32xf32>
    %c0_99 = arith.constant 0 : index
    %c0_100 = arith.constant 0 : index
    %216 = vector.load %arg25[%c0_99, %c0_100] : memref<8x32xf32, #tpu.memory_space<vmem>>, vector<8x32xf32>
    tpu.vector_store %arg25[%c0_99, %c0_100], %215 {strides = array<i32>} : memref<8x32xf32, #tpu.memory_space<vmem>>, vector<8x32xf32>,
    %c1_i32 = arith.constant 1 : i32
    %217 = arith.cmpi eq, %arg1, %c1_i32 : i32
    %218 = arith.extui %217 : i1 to i32
    %c0_i32_101 = arith.constant 0 : i32
    %219 = arith.cmpi ne, %218, %c0_i32_101 : i32
    scf.if %219 {
      %220 = arith.truncf %215 : vector<8x32xf32> to vector<8x32xbf16>
      %c0_102 = arith.constant 0 : index
      %c0_103 = arith.constant 0 : index
      %221 = vector.load %arg22[%c0_102, %c0_103] : memref<32x64xbf16, #tpu.memory_space<vmem>>, vector<32x64xbf16>
      %cst_104 = arith.constant dense<0.000000e+00> : vector<8x64xf32>
      %222 = tpu.matmul %220, %221, %cst_104 {dimension_numbers = #tpu.dot_dimension_numbers<[1], [0], [0], [1], [0, 0, 1, 1], [], []>} : vector<8x32xbf16>, vector<32x64xbf16>, vector<8x64xf32> -> vector<8x64xf32>
      %c0_105 = arith.constant 0 : index
      %c0_106 = arith.constant 0 : index
      %223 = vector.load %arg23[%c0_105, %c0_106] : memref<1x64xf32, #tpu.memory_space<vmem>>, vector<1x64xf32>
      %224 = vector.broadcast %223 : vector<1x64xf32> to vector<8x64xf32>
      %225 = arith.addf %222, %224 : vector<8x64xf32>
      %226 = vector.extract_strided_slice %225 {offsets = [0, 0], sizes = [1, 64], strides = [1, 1]} : vector<8x64xf32> to vector<1x64xf32>
      %227 = vector.extract_strided_slice %226 {offsets = [0, 0], sizes = [1, 16], strides = [1, 1]} : vector<1x64xf32> to vector<1x16xf32>
      %c0_i32_107 = arith.constant 0 : i32
      %228 = vector.broadcast %c0_i32_107 : i32 to vector<1x16xi32>
      %229 = vector.extract_strided_slice %226 {offsets = [0, 16], sizes = [1, 16], strides = [1, 1]} : vector<1x64xf32> to vector<1x16xf32>
      %230 = arith.cmpf ogt, %229, %227 : vector<1x16xf32>
      %c1_i32_108 = arith.constant 1 : i32
      %231 = vector.broadcast %c1_i32_108 : i32 to vector<1x16xi32>
      %232 = arith.select %230, %231, %228 : vector<1x16xi1>, vector<1x16xi32>
      %233 = arith.select %230, %229, %227 : vector<1x16xi1>, vector<1x16xf32>
      %234 = vector.extract_strided_slice %226 {offsets = [0, 32], sizes = [1, 16], strides = [1, 1]} : vector<1x64xf32> to vector<1x16xf32>
      %235 = arith.cmpf ogt, %234, %233 : vector<1x16xf32>
      %c2_i32 = arith.constant 2 : i32
      %236 = vector.broadcast %c2_i32 : i32 to vector<1x16xi32>
      %237 = arith.select %235, %236, %232 : vector<1x16xi1>, vector<1x16xi32>
      %238 = arith.select %235, %234, %233 : vector<1x16xi1>, vector<1x16xf32>
      %239 = vector.extract_strided_slice %226 {offsets = [0, 48], sizes = [1, 16], strides = [1, 1]} : vector<1x64xf32> to vector<1x16xf32>
      %240 = arith.cmpf ogt, %239, %238 : vector<1x16xf32>
      %c3_i32 = arith.constant 3 : i32
      %241 = vector.broadcast %c3_i32 : i32 to vector<1x16xi32>
      %242 = arith.select %240, %241, %237 : vector<1x16xi1>, vector<1x16xi32>
      %c0_109 = arith.constant 0 : index
      %c0_110 = arith.constant 0 : index
      %c0_111 = arith.constant 0 : index
      %243 = vector.load %arg24[%c0_109, %c0_110, %c0_111] : memref<1x1x16xi32, #tpu.memory_space<vmem>>, vector<1x1x16xi32>
      %244 = vector.shape_cast %243 : vector<1x1x16xi32> to vector<1x16xi32>
      %245 = vector.shape_cast %242 : vector<1x16xi32> to vector<1x1x16xi32>
      tpu.vector_store %arg24[%c0_109, %c0_110, %c0_111], %245 {strides = array<i32>} : memref<1x1x16xi32, #tpu.memory_space<vmem>>, vector<1x1x16xi32>,
    } else {
    }
    return
  }
  func.func @transform_0(%arg0: i32, %arg1: i32) -> (i32, i32, i32) {
    %c0_i32 = arith.constant 0 : i32
    %c0_i32_0 = arith.constant 0 : i32
    %c0_i32_1 = arith.constant 0 : i32
    return %arg0, %c0_i32, %c0_i32_0 : i32, i32, i32
  }
  func.func @transform_1(%arg0: i32, %arg1: i32) -> (i32, i32, i32) {
    %c0_i32 = arith.constant 0 : i32
    %c0_i32_0 = arith.constant 0 : i32
    %c0_i32_1 = arith.constant 0 : i32
    return %arg0, %c0_i32, %c0_i32_0 : i32, i32, i32
  }
  func.func @transform_2(%arg0: i32, %arg1: i32) -> (i32, i32) {
    %c0_i32 = arith.constant 0 : i32
    %c0_i32_0 = arith.constant 0 : i32
    %c0_i32_1 = arith.constant 0 : i32
    return %c0_i32, %c0_i32_0 : i32, i32
  }
  func.func @transform_3(%arg0: i32, %arg1: i32) -> (i32, i32) {
    %c0_i32 = arith.constant 0 : i32
    %c0_i32_0 = arith.constant 0 : i32
    %c0_i32_1 = arith.constant 0 : i32
    return %c0_i32, %c0_i32_0 : i32, i32
  }
  func.func @transform_4(%arg0: i32, %arg1: i32) -> (i32, i32, i32) {
    %c0_i32 = arith.constant 0 : i32
    %c0_i32_0 = arith.constant 0 : i32
    %c0_i32_1 = arith.constant 0 : i32
    return %arg1, %c0_i32, %c0_i32_0 : i32, i32, i32
  }
  func.func @transform_5(%arg0: i32, %arg1: i32) -> (i32, i32, i32) {
    %c0_i32 = arith.constant 0 : i32
    %c0_i32_0 = arith.constant 0 : i32
    %c0_i32_1 = arith.constant 0 : i32
    return %arg1, %c0_i32, %c0_i32_0 : i32, i32, i32
  }
  func.func @transform_6(%arg0: i32, %arg1: i32) -> (i32, i32, i32) {
    %c0_i32 = arith.constant 0 : i32
    %c0_i32_0 = arith.constant 0 : i32
    %c0_i32_1 = arith.constant 0 : i32
    return %arg1, %c0_i32, %c0_i32_0 : i32, i32, i32
  }
  func.func @transform_7(%arg0: i32, %arg1: i32) -> (i32, i32, i32) {
    %c0_i32 = arith.constant 0 : i32
    %c0_i32_0 = arith.constant 0 : i32
    %c0_i32_1 = arith.constant 0 : i32
    return %arg1, %c0_i32, %c0_i32_0 : i32, i32, i32
  }
  func.func @transform_8(%arg0: i32, %arg1: i32) -> (i32, i32, i32) {
    %c0_i32 = arith.constant 0 : i32
    %c0_i32_0 = arith.constant 0 : i32
    %c0_i32_1 = arith.constant 0 : i32
    return %arg1, %c0_i32, %c0_i32_0 : i32, i32, i32
  }
  func.func @transform_9(%arg0: i32, %arg1: i32) -> (i32, i32, i32) {
    %c0_i32 = arith.constant 0 : i32
    %c0_i32_0 = arith.constant 0 : i32
    %c0_i32_1 = arith.constant 0 : i32
    return %arg1, %c0_i32, %c0_i32_0 : i32, i32, i32
  }
  func.func @transform_10(%arg0: i32, %arg1: i32) -> (i32, i32, i32) {
    %c0_i32 = arith.constant 0 : i32
    %c0_i32_0 = arith.constant 0 : i32
    %c0_i32_1 = arith.constant 0 : i32
    return %arg1, %c0_i32, %c0_i32_0 : i32, i32, i32
  }
  func.func @transform_11(%arg0: i32, %arg1: i32) -> (i32, i32, i32) {
    %c0_i32 = arith.constant 0 : i32
    %c0_i32_0 = arith.constant 0 : i32
    %c0_i32_1 = arith.constant 0 : i32
    return %arg1, %c0_i32, %c0_i32_0 : i32, i32, i32
  }
  func.func @transform_12(%arg0: i32, %arg1: i32) -> (i32, i32, i32) {
    %c0_i32 = arith.constant 0 : i32
    %c0_i32_0 = arith.constant 0 : i32
    %c0_i32_1 = arith.constant 0 : i32
    return %arg1, %c0_i32, %c0_i32_0 : i32, i32, i32
  }
  func.func @transform_13(%arg0: i32, %arg1: i32) -> (i32, i32, i32) {
    %c0_i32 = arith.constant 0 : i32
    %c0_i32_0 = arith.constant 0 : i32
    %c0_i32_1 = arith.constant 0 : i32
    return %arg1, %c0_i32, %c0_i32_0 : i32, i32, i32
  }
  func.func @transform_14(%arg0: i32, %arg1: i32) -> (i32, i32, i32) {
    %c0_i32 = arith.constant 0 : i32
    %c0_i32_0 = arith.constant 0 : i32
    %c0_i32_1 = arith.constant 0 : i32
    return %arg1, %c0_i32, %c0_i32_0 : i32, i32, i32
  }
  func.func @transform_15(%arg0: i32, %arg1: i32) -> (i32, i32, i32) {
    %c0_i32 = arith.constant 0 : i32
    %c0_i32_0 = arith.constant 0 : i32
    %c0_i32_1 = arith.constant 0 : i32
    return %arg1, %c0_i32, %c0_i32_0 : i32, i32, i32
  }
  func.func @transform_16(%arg0: i32, %arg1: i32) -> (i32, i32, i32) {
    %c0_i32 = arith.constant 0 : i32
    %c0_i32_0 = arith.constant 0 : i32
    %c0_i32_1 = arith.constant 0 : i32
    return %arg1, %c0_i32, %c0_i32_0 : i32, i32, i32
  }
  func.func @transform_17(%arg0: i32, %arg1: i32) -> (i32, i32, i32) {
    %c0_i32 = arith.constant 0 : i32
    %c0_i32_0 = arith.constant 0 : i32
    %c0_i32_1 = arith.constant 0 : i32
    return %arg1, %c0_i32, %c0_i32_0 : i32, i32, i32
  }
  func.func @transform_18(%arg0: i32, %arg1: i32) -> (i32, i32, i32) {
    %c0_i32 = arith.constant 0 : i32
    %c0_i32_0 = arith.constant 0 : i32
    %c0_i32_1 = arith.constant 0 : i32
    return %arg1, %c0_i32, %c0_i32_0 : i32, i32, i32
  }
  func.func @transform_19(%arg0: i32, %arg1: i32) -> (i32, i32, i32) {
    %c0_i32 = arith.constant 0 : i32
    %c0_i32_0 = arith.constant 0 : i32
    %c0_i32_1 = arith.constant 0 : i32
    return %arg1, %c0_i32, %c0_i32_0 : i32, i32, i32
  }
  func.func @transform_20(%arg0: i32, %arg1: i32) -> (i32, i32) {
    %c0_i32 = arith.constant 0 : i32
    %c0_i32_0 = arith.constant 0 : i32
    %c0_i32_1 = arith.constant 0 : i32
    return %c0_i32, %c0_i32_0 : i32, i32
  }
  func.func @transform_21(%arg0: i32, %arg1: i32) -> (i32, i32) {
    %c0_i32 = arith.constant 0 : i32
    %c0_i32_0 = arith.constant 0 : i32
    %c0_i32_1 = arith.constant 0 : i32
    return %c0_i32, %c0_i32_0 : i32, i32
  }
  func.func @transform_22(%arg0: i32, %arg1: i32) -> (i32, i32, i32) {
    %c0_i32 = arith.constant 0 : i32
    %c0_i32_0 = arith.constant 0 : i32
    %c0_i32_1 = arith.constant 0 : i32
    return %arg0, %c0_i32, %c0_i32_0 : i32, i32, i32
  }
}

</mosaic_0001>

<bundles_post_ra>
// kernel: tpu_custom_call.1
= control target key start
LH: loop header
LB: loop body
LE: loop exit
PB: predicated region body
PF: predicated region fallthrough
CT: control target
= control target key end

     0   :  { %s4136_s0 = inlined_call_operand.hbm [shape: f32[2,8,32], index: 0, kind: input, shape index: {}]   ;;  %s4137_s1 = inlined_call_operand.vmem [shape: f32[2,1,8], index: 1, kind: input, shape index: {}]   ;;  %s4138_s2 = inlined_call_operand.hbm [shape: f32[1,32], index: 2, kind: input, shape index: {}]   ;;  %s4139_s3 = inlined_call_operand.hbm [shape: f32[1,32], index: 3, kind: input, shape index: {}]   ;;  %s4140_s4 = inlined_call_operand.vmem [shape: bf16[2,32,32], index: 4, kind: input, shape index: {}]   ;;  %s4141_s5 = inlined_call_operand.hbm [shape: f32[2,1,32], index: 5, kind: input, shape index: {}]   ;;  %s4142_s6 = inlined_call_operand.vmem [shape: bf16[2,32,32], index: 6, kind: input, shape index: {}]   ;;  %s4143_s7 = inlined_call_operand.vmem [shape: f32[2,1,32], index: 7, kind: input, shape index: {}]   ;;  %s4144_s8 = inlined_call_operand.vmem [shape: bf16[2,32,32], index: 8, kind: input, shape index: {}]   ;;  %s4145_s9 = inlined_call_operand.vmem [shape: f32[2,1,32], index: 9, kind: input, shape index: {}]   ;;  %s4146_s10 = inlined_call_operand.hbm [shape: bf16[2,32,32], index: 10, kind: input, shape index: {}]   ;;  %s4147_s11 = inlined_call_operand.vmem [shape: f32[2,1,32], index: 11, kind: input, shape index: {}]   ;;  %s4148_s12 = inlined_call_operand.vmem [shape: f32[2,1,32], index: 12, kind: input, shape index: {}]   ;;  %s4149_s13 = inlined_call_operand.vmem [shape: f32[2,1,32], index: 13, kind: input, shape index: {}]   ;;  %s4150_s14 = inlined_call_operand.hbm [shape: bf16[2,32,64], index: 14, kind: input, shape index: {}]   ;;  %s4151_s15 = inlined_call_operand.hbm [shape: f32[2,1,64], index: 15, kind: input, shape index: {}]   ;;  %s4152_s16 = inlined_call_operand.vmem [shape: bf16[2,64,32], index: 16, kind: input, shape index: {}]   ;;  %s4153_s17 = inlined_call_operand.vmem [shape: f32[2,1,32], index: 17, kind: input, shape index: {}]   ;;  %s4154_s18 = inlined_call_operand.vmem [shape: f32[2,1,32], index: 18, kind: input, shape index: {}]   ;;  %s4155_s19 = inlined_call_operand.vmem [shape: f32[2,1,32], index: 19, kind: input, shape index: {}]   ;;  %s4156_s20 = inlined_call_operand.vmem [shape: bf16[32,64], index: 20, kind: input, shape index: {}]   ;;  %s4157_s21 = inlined_call_operand.vmem [shape: f32[1,64], index: 21, kind: input, shape index: {}]   ;;  %s4158_s22 = inlined_call_operand.hbm [shape: s32[2,1,16], index: 22, kind: output, shape index: {}]  }
   0x1   :  { %4209 = sst [smem:[#allocation41_spill]] %s4136_s0 }
   0x2   :  { %4210 = sst [smem:[#allocation42_spill]] %s4137_s1 }
   0x3   :  { %4211 = sst [smem:[#allocation43_spill]] %s4138_s2 }
   0x4   :  { %4212 = sst [smem:[#allocation44_spill]] %s4139_s3 }
   0x5   :  { %4213 = sst [smem:[#allocation45_spill]] %s4140_s4 }
   0x6   :  { %4214 = sst [smem:[#allocation46_spill]] %s4141_s5 }
   0x7   :  { %4215 = sst [smem:[#allocation47_spill]] %s4142_s6 }
   0x8   :  { %4216 = sst [smem:[#allocation48_spill]] %s4143_s7 }
   0x9   :  { %4217 = sst [smem:[#allocation49_spill]] %s4144_s8 }
   0xa   :  { %4218 = sst [smem:[#allocation50_spill]] %s4145_s9 }
   0xb   :  { %4219 = sst [smem:[#allocation51_spill]] %s4146_s10 }
   0xc   :  { %4220 = sst [smem:[#allocation52_spill]] %s4147_s11 }
   0xd   :  { %4221 = sst [smem:[#allocation53_spill]] %s4148_s12 }
   0xe   :  { %4222 = sst [smem:[#allocation54_spill]] %s4149_s13 }
   0xf   :  { %4223 = sst [smem:[#allocation55_spill]] %s4150_s14 }
  0x10   :  { %4224 = sst [smem:[#allocation56_spill]] %s4151_s15 }
  0x11   :  { %4225 = sst [smem:[#allocation57_spill]] %s4152_s16 }
  0x12   :  { %4226 = sst [smem:[#allocation58_spill]] %s4153_s17 }
  0x13   :  { %4227 = sst [smem:[#allocation59_spill]] %s4154_s18 }
  0x14   :  { %4228 = sst [smem:[#allocation60_spill]] %s4155_s19 }
  0x15   :  { %4229 = sst [smem:[#allocation61_spill]] %s4156_s20 }
  0x16   :  { %4230 = sst [smem:[#allocation62_spill]] %s4157_s21 }
  0x17   :  { %4231 = sst [smem:[#allocation63_spill]] %s4158_s22 }
  0x18   :  { %27 = vsyncpa [#allocation5], 0 }
  0x19   :  { %29 = vsyncpa [#allocation5 + $0x1], 0 }
  0x1a   :  { %30 = vsyncpa [#allocation8], 0 }
  0x1b   :  { %31 = vsyncpa [#allocation11], 0 }
  0x1c   :  { %33 = vsyncpa [#allocation11 + $0x1], 0 }
  0x1d   :  { %34 = vsyncpa [#allocation14], 0 }
  0x1e   :  { %36 = vsyncpa [#allocation14 + $0x1], 0 }
  0x1f   :  { %37 = vsyncpa [#allocation6], 0 }
  0x20   :  { %39 = vsyncpa [#allocation6 + $0x1], 0  ;;  %s3410_s3 = smov 0   ;;  %s3412_s28 = smov 0  }
  0x21   :  { %s3414_s29 = smov 0   ;;  %s3416_s30 = smov 0  }
  0x22   :  { %s3418_s4 = smov 0   ;;  %s3420_s0 = smov 0  }
  0x23   :  { %s3422_s23 = smov 0   ;;  %s3424_s1 = smov 0  }
  0x24   :  { %s3426_s5 = smov 0   ;;  %s3428_s24 = smov 0  }
  0x25   :  { %s3430_s6 = smov 0  }
  0x26 LB: > { %4232 = sst [smem:[#allocation22_spill]] %s3234_s28  ;;  %s3464_s25 = sadd.s32 4294967295, %s3270_s6   ;;  %s3270_s6 = sphi %s3430_s6, %s45_s6   ;;  %s3266_s24 = sphi %s3428_s24, %s4350_s24   ;;  %s3262_s5 = sphi %s3426_s5, %s4349_s5   ;;  %s3258_s1 = sphi %s3424_s1, %s4348_s1   ;;  %s3254_s23 = sphi %s3422_s23, %s4347_s23   ;;  %s3250_s0 = sphi %s3420_s0, %s4346_s0   ;;  %s3246_s4 = sphi %s3418_s4, %s4345_s4   ;;  %s3242_s30 = sphi %s3416_s30, %s4344_s30   ;;  %s3238_s29 = sphi %s3414_s29, %s4343_s29   ;;  %s3234_s28 = sphi %s3412_s28, %s4342_s28   ;;  %s3230_s3 = sphi %s3410_s3, %s4341_s3  }
  0x27   : > { %4233 = sst [smem:[#allocation23_spill]] %s3238_s29  ;;  %p197_p0 = scmp.ne.s32.totalorder %s3234_s28, %s3230_s3 }
  0x28   : > { %4234 = sst [smem:[#allocation24_spill]] %s3242_s30  ;;  %p4165_p1 = scmp.eq.s32.totalorder %s3464_s25, 0 }
  0x29   : > { %4235 = sst [smem:[#allocation25_spill]] %s3246_s4  ;;  %p2501_p3 = scmp.ge.s32.totalorder %s3270_s6, 1 }
  0x2a   : > { %4236 = sst [smem:[#allocation26_spill]] %s3250_s0  ;;  %p640_p4 = scmp.lt.s32.totalorder %s3270_s6, 5 }
  0x2b   : > { %4237 = sst [smem:[#allocation27_spill]] %s3254_s23  ;;  %p3473_p5 = por %p197_p0, %p4165_p1 }
  0x2c   : > { %4238 = sst [smem:[#allocation28_spill]] %s3258_s1  ;;  %p3477_p6 = pnand %p2501_p3, %p640_p4 }
  0x2d   : > { %4239 = sst [smem:[#allocation29_spill]] %s3262_s5  ;;  %s3272_s27 = smov [#allocation7]  }
  0x2e   : > { %4240 = sst [smem:[#allocation30_spill]] %s3266_s24  ;;  %s653_s22 = sshll.u32 %s3272_s27, 4  ;;  %s654_s22 = int_to_ptr.vmem [resolvable:$true] %s653_s22 }
  0x2f   : > { %4241 = sst [smem:[#allocation31_spill]] %s3270_s6  ;;  %p2752_p7 = pneg %p3477_p6 }
  0x30   : > { %s4242_s26 = scalar_select %p3473_p5, 1, 0 }
  0x31   : > { %s4244_s2 = scalar_select %p3477_p6, 1, 0 }
  0x32   : > { %4243 = sst [smem:[#allocation32_spill]] %s4242_s26  ;;  %p3485_p8 = pnand %p2752_p7, %p4165_p1 }
  0x33   : > { %4245 = sst [smem:[#allocation33_spill]] %s4244_s2  ;;  %s54_s21 = sadd.s32 1, %s3262_s5 }
  0x34   : > { %s4246_s3 = scalar_select %p3485_p8, 1, 0 }
  0x35   : > { %p3490_p9 = scmp.ge.s32.totalorder %s54_s21, 2  ;;  %s4248_s17 = sld [smem:[#allocation43_spill]] }
  0x36   : > { %p4175_p11 = pneg %p3485_p8 }
  0x37   : > { %s4247_s20 = scalar_select %p3490_p9, 1, 0 }
  0x3b   : > { %s2930_s16 = scalar_lea.hbm %s4248_s17, 16 }
  0x3c   : > { %p2931_p10 = scmp.ne.s32.totalorder %s4248_s17, %s2930_s16  ;;  %p2937_p0 = scmp.lt.u32.totalorder %s2930_s16, %s4248_s17 }
  0x3e   : > { %p2933_p12 = pnand %p4175_p11, %p2931_p10 }
  0x40   : > { %p2934_p13 = pneg %p2933_p12 }
  0x42   : > { %p2939_p3 = pnand %p2937_p0, %p2934_p13 }
  0x44   : > { %2942 = shalt.err (!%p2939_p3)
}
  0x45   : > { %s2943_s9 = scalar_lea.vmem %s654_s22, 16  ;;  %s2950_s13 = scalar_lea.vmem %s654_s22, 32 }
  0x46   : > { %p2944_p4 = scmp.ne.s32.totalorder %s654_s22, %s2943_s9  ;;  %p2951_p2 = scmp.lt.s32.totalorder %s654_s22, %s654_s22 }
  0x47   : > { %p2952_p5 = scmp.lt.s32.totalorder %s2950_s13, %s2943_s9 }
  0x48   : > { %p2946_p7 = pnand %p2944_p4, %p4175_p11 }
  0x49   : > { %p2953_p6 = por %p2952_p5, %p2951_p2 }
  0x4a   : > { %p2947_p1 = pneg %p2946_p7 }
  0x4c   : > { %p2954_p9 = pnand %p2953_p6, %p2947_p1 }
  0x4e   : > { %2957 = shalt.err (!%p2954_p9)
}
  0x4f   : > { %2755 = dma.hbm_to_vmem [thread:$0]  (!%p3485_p8), %s4248_s17, 16, %s654_s22, [#allocation8]  }
  0x50   : > { %p4249_p1 = scmp.ne.s32.totalorder %s4247_s20, 0  ;;  %p4174_p2 = scmp.eq.s32.totalorder %s3270_s6, 0 }
  0x51   : > { %s184_s9 = sadd.s32 1, %s3238_s29  ;;  %p191_p5 = scmp.ne.s32.totalorder %s3238_s29, %s3234_s28 }
  0x52   : > { %s4352_s21 = smov (%p4249_p1, %s54_s21), 0  ;;  %p4173_p9 = scmp.lt.s32.totalorder %s3270_s6, 4 }
  0x53   : > { %4250 = sst [smem:[#allocation34_spill]] %s4352_s21  ;;  %s181_s12 = ssub.s32 %s3262_s5, %s4352_s21 }
  0x54   : > { %p182_p6 = scmp.eq.s32.totalorder %s181_s12, 0  ;;  %p193_p10 = por %p191_p5, %p4174_p2 }
  0x55   : > { %s3534_s27 = sand.u32 1, %s3238_s29   ;;  %s4172_s22 = sshll.u32 %s3262_s5, 4 }
  0x56   : > { %s3531_s19 = scalar_select %p182_p6, %s3238_s29, %s184_s9  }
  0x57   : > { %s4252_s11 = sld [smem:[#allocation46_spill]]  ;;  %s716_s12 = scalar_lea.vmem [#allocation10], %s3534_s27 }
  0x58   : > { %4251 = sst [smem:[#allocation35_spill]] %s3531_s19  ;;  %s723_s21 = sshll.u32 %s716_s12, 4  ;;  %s3545_s21 = int_to_ptr.vmem [resolvable:$true] %s723_s21 }
  0x59   : > { %p3549_p12 = pnand %p4173_p9, %p193_p10  ;;  %s4254_s19 = sand.u32 1, %s3270_s6  }
  0x5a   : > { %s3556_s29 = scalar_lea.sflag [#allocation11], %s4254_s19 }
  0x5b   : > { %s4253_s9 = scalar_select %p3549_p12, 1, 0 }
  0x5c   : > { %p3562_p0 = pneg %p3549_p12 }
  0x5d   : > { %s3542_s17 = scalar_lea.hbm %s4252_s11, %s4172_s22  ;;  %s2963_s8 = scalar_lea.hbm %s4252_s11, 32 }
  0x5e   : > { %s2958_s13 = scalar_lea.hbm %s3542_s17, 16  ;;  %p2964_p7 = scmp.lt.u32.totalorder %s3542_s17, %s4252_s11 }
  0x5f   : > { %p2959_p13 = scmp.ne.s32.totalorder %s3542_s17, %s2958_s13  ;;  %p2965_p5 = scmp.lt.u32.totalorder %s2963_s8, %s2958_s13 }
  0x60   : > { %s4255_s18 = scalar_select %p3562_p0, 1, 0 }
  0x61   : > { %p2961_p3 = pnand %p3562_p0, %p2959_p13  ;;  %p2966_p6 = por %p2965_p5, %p2964_p7 }
  0x62   : > { %p2967_p10 = scmp.lt.u32.totalorder %s2958_s13, %s3542_s17 }
  0x63   : > { %p2962_p4 = pneg %p2961_p3 }
  0x64   : > { %p2968_p9 = por %p2967_p10, %p2966_p6 }
  0x66   : > { %p2969_p2 = pnand %p2968_p9, %p2962_p4 }
  0x68   : > { %2972 = shalt.err (!%p2969_p2)
}
  0x69   : > { %s2973_s19 = scalar_lea.vmem %s3545_s21, 16  ;;  %s3273_s22 = smov [#allocation10]  }
  0x6a   : > { %p2974_p13 = scmp.ne.s32.totalorder %s3545_s21, %s2973_s19  ;;  %s2978_s12 = sshll.u32 %s3273_s22, 4  ;;  %s2979_s12 = int_to_ptr.vmem [resolvable:$false] %s2978_s12 }
  0x6b   : > { %s2980_s7 = scalar_lea.vmem %s2979_s12, 32  ;;  %p2981_p1 = scmp.lt.s32.totalorder %s3545_s21, %s2979_s12 }
  0x6c   : > { %p2976_p3 = pnand %p2974_p13, %p3562_p0  ;;  %p2982_p8 = scmp.lt.s32.totalorder %s2980_s7, %s2973_s19 }
  0x6e   : > { %p2977_p11 = pneg %p2976_p3  ;;  %p2983_p7 = por %p2982_p8, %p2981_p1 }
  0x70   : > { %p2984_p5 = pnand %p2983_p7, %p2977_p11 }
  0x72   : > { %2987 = shalt.err (!%p2984_p5)
}
  0x73   : > { %2765 = dma.hbm_to_vmem [thread:$0]  (!%p3549_p12), %s3542_s17, 16, %s3545_s21, %s3556_s29  }
  0x74   : > { %s4256_s8 = sshll.u32 %s3534_s27, 4  ;;  %s4257_s22 = sshll.u32 %s3262_s5, 4 }
  0x75   : > { %s762_s16 = scalar_lea.vmem [#allocation12], %s4256_s8  ;;  %s4258_s15 = sld [smem:[#allocation56_spill]] }
  0x76   : > { %s769_s13 = sshll.u32 %s762_s16, 4  ;;  %s2579_s11 = sshll.u32 %s3262_s5, 8  ;;  %s3595_s13 = int_to_ptr.vmem [resolvable:$true] %s769_s13 }
  0x77   : > { %s4259_s10 = sld [smem:[#allocation51_spill]]  ;;  %s4260_s14 = sld [smem:[#allocation55_spill]] }
  0x78   : > { %s4261_s21 = smov %s4256_s8 }
  0x79   : > { %s801_s8 = scalar_lea.vmem [#allocation13], %s4261_s21 }
  0x7a   : > { %s808_s16 = sshll.u32 %s801_s8, 4  ;;  %s3610_s16 = int_to_ptr.vmem [resolvable:$true] %s808_s16 }
  0x7b   : > { %s3593_s7 = scalar_lea.hbm %s4258_s15, %s4257_s22  ;;  %s4262_s22 = sand.u32 1, %s3270_s6  }
  0x7c   : > { %s3614_s19 = scalar_lea.sflag [#allocation14], %s4262_s22 }
  0x7d   : > { %s3601_s26 = scalar_lea.hbm %s4259_s10, %s2579_s11  ;;  %s3606_s17 = scalar_lea.hbm %s4260_s14, %s2579_s11 }
  0x7e   : > { %s2988_s23 = scalar_lea.hbm %s3606_s17, 256  ;;  %s2993_s2 = scalar_lea.hbm %s4260_s14, 512 }
  0x7f   : > { %p2989_p8 = scmp.ne.s32.totalorder %s3606_s17, %s2988_s23  ;;  %p2994_p2 = scmp.lt.u32.totalorder %s3606_s17, %s4260_s14 }
  0x80   : > { %p2995_p9 = scmp.lt.u32.totalorder %s2993_s2, %s2988_s23  ;;  %p2997_p6 = scmp.lt.u32.totalorder %s2988_s23, %s3606_s17 }
  0x81   : > { %p2991_p11 = pnand %p2989_p8, %p3562_p0 }
  0x82   : > { %p2996_p4 = por %p2995_p9, %p2994_p2 }
  0x83   : > { %p2992_p1 = pneg %p2991_p11 }
  0x84   : > { %p2998_p10 = por %p2997_p6, %p2996_p4 }
  0x86   : > { %p2999_p13 = pnand %p2998_p10, %p2992_p1 }
  0x88   : > { %3002 = shalt.err (!%p2999_p13)
}
  0x89   : > { %s3003_s21 = scalar_lea.vmem %s3610_s16, 256  ;;  %s3274_s8 = smov [#allocation13]  }
  0x8a   : > { %p3004_p3 = scmp.ne.s32.totalorder %s3610_s16, %s3003_s21  ;;  %s3008_s22 = sshll.u32 %s3274_s8, 4  ;;  %s3009_s22 = int_to_ptr.vmem [resolvable:$false] %s3008_s22 }
  0x8b   : > { %s3010_s28 = scalar_lea.vmem %s3009_s22, 512  ;;  %p3011_p8 = scmp.lt.s32.totalorder %s3610_s16, %s3009_s22 }
  0x8c   : > { %p3006_p7 = pnand %p3004_p3, %p3562_p0  ;;  %p3012_p11 = scmp.lt.s32.totalorder %s3010_s28, %s3003_s21 }
  0x8e   : > { %p3007_p5 = pneg %p3006_p7  ;;  %p3013_p2 = por %p3012_p11, %p3011_p8 }
  0x90   : > { %p3014_p9 = pnand %p3013_p2, %p3007_p5 }
  0x92   : > { %3017 = shalt.err (!%p3014_p9)
}
  0x93   : > { %s4191_s23 = smov 64   ;;  %s4192_s1 = smov 4  }
  0x94   : > { %2771 = dma.hbm_to_vmem [thread:$0]  (!%p3549_p12), %s3606_s17, 256, %s3610_s16, %s3614_s19, %s4191_s23, %s4191_s23, %s4192_s1  }
  0x95   : > { %s3277_s2 = smov [#allocation9]   ;;  %s4263_s8 = sld [smem:[#allocation44_spill]] }
  0x96   : > { %s664_s11 = sshll.u32 %s3277_s2, 4  ;;  %p4264_p4 = scmp.ne.s32.totalorder %s4246_s3, 0  ;;  %s665_s11 = int_to_ptr.vmem [resolvable:$true] %s664_s11 }
  0x98   : > { %p4265_p6 = pneg %p4264_p4 }
  0x9b   : > { %s3018_s22 = scalar_lea.hbm %s4263_s8, 16 }
  0x9c   : > { %p3019_p1 = scmp.ne.s32.totalorder %s4263_s8, %s3018_s22  ;;  %p3025_p3 = scmp.lt.u32.totalorder %s3018_s22, %s4263_s8 }
  0x9e   : > { %p3021_p10 = pnand %p3019_p1, %p4265_p6 }
  0xa0   : > { %p3022_p13 = pneg %p3021_p10 }
  0xa2   : > { %p3027_p7 = pnand %p3025_p3, %p3022_p13 }
  0xa4   : > { %3030 = shalt.err (!%p3027_p7)
}
  0xa5   : > { %s3031_s17 = scalar_lea.vmem %s665_s11, 16  ;;  %p4266_p8 = pmov %p4265_p6 }
  0xa6   : > { %p3032_p5 = scmp.ne.s32.totalorder %s665_s11, %s3031_s17  ;;  %s3038_s16 = scalar_lea.vmem %s665_s11, 32 }
  0xa7   : > { %p3039_p9 = scmp.lt.s32.totalorder %s665_s11, %s665_s11  ;;  %p3040_p12 = scmp.lt.s32.totalorder %s3038_s16, %s3031_s17 }
  0xa8   : > { %p3034_p11 = pnand %p3032_p5, %p4266_p8 }
  0xa9   : > { %p3041_p0 = por %p3040_p12, %p3039_p9 }
  0xaa   : > { %p3035_p2 = pneg %p3034_p11 }
  0xac   : > { %p3042_p1 = pnand %p3041_p0, %p3035_p2 }
  0xae   : > { %3045 = shalt.err (!%p3042_p1)
}
  0xaf   : > { %2758 = dma.hbm_to_vmem [thread:$0]  (!%p4264_p4), %s4263_s8, 16, %s665_s11, [#allocation8]  }
  0xb0   : > { %s2500_s5 = sadd.s32 4294967294, %s3270_s6   ;;  %s57_s3 = sadd.s32 1, %s3266_s24 }
  0xb1   : > { %p4267_p12 = scmp.ne.s32.totalorder %s4247_s20, 0  ;;  %s64_s2 = sadd.s32 1, %s3250_s0 }
  0xb2   : > { %p71_p0 = scmp.ne.s32.totalorder %s3250_s0, %s3246_s4  ;;  %p77_p10 = scmp.ne.s32.totalorder %s3246_s4, %s3242_s30 }
  0xb3   : > { %s4354_s3 = smov (!%p4267_p12, %s57_s3), %s3266_s24  ;;  %p4268_p13 = scmp.eq.s32.totalorder %s3270_s6, 0 }
  0xb4   : > { %p59_p6 = scmp.ge.s32.totalorder %s4354_s3, 2  ;;  %p4270_p7 = scmp.eq.s32.totalorder %s3464_s25, 3 }
  0xb5   : > { %p3673_p3 = por %p4268_p13, %p71_p0  ;;  %p4274_p5 = scmp.eq.s32.totalorder %s3464_s25, 0 }
  0xb6   : > { %p3679_p4 = por %p4270_p7, %p71_p0  ;;  %s4356_s3 = smov (%p59_p6, %s4354_s3), 0 }
  0xb7   : > { %4273 = sst [smem:[#allocation37_spill]] %s4356_s3  ;;  %p3687_p8 = por %p4274_p5, %p77_p10 }
  0xb8   : > { %s4271_s11 = scalar_select %p3679_p4, 1, 0 }
  0xb9   : > { %s4275_s20 = scalar_select %p3687_p8, 1, 0 }
  0xba   : > { %4272 = sst [smem:[#allocation36_spill]] %s4271_s11  ;;  %p633_p11 = scmp.eq.s32.totalorder %s2500_s5, 3 }
  0xbb   : > { %s61_s21 = ssub.s32 %s3266_s24, %s4356_s3  ;;  %s4196_s22 = sand.u32 1, %s3250_s0  }
  0xbc   : > { %p62_p2 = scmp.eq.s32.totalorder %s61_s21, 0  ;;  %p3694_p9 = por %p633_p11, %p77_p10 }
  0xbd   : > { %s2505_s17 = sshll.u32 %s4196_s22, 3  ;;  %s2506_s14 = sshll.u32 %s3266_s24, 7 }
  0xbe   : > { %s4276_s28 = scalar_select %p3694_p9, 1, 0 }
  0xbf   : > { %s3701_s16 = scalar_select %p62_p2, %s3250_s0, %s64_s2  }
  0xc0   : > { %4277 = sst [smem:[#allocation38_spill]] %s4276_s28  ;;  %s685_s5 = scalar_lea.vmem [#allocation4], %s2505_s17 }
  0xc1   : > { %4278 = sst [smem:[#allocation39_spill]] %s3701_s16  ;;  %s692_s3 = sshll.u32 %s685_s5, 4  ;;  %s3709_s3 = int_to_ptr.vmem [resolvable:$true] %s692_s3 }
  0xc2   : > { %s4279_s1 = sld [smem:[#allocation41_spill]]  ;;  %p4281_p1 = scmp.lt.s32.totalorder %s3270_s6, 4 }
  0xc3   : > { %s3046_s22 = scalar_lea.hbm %s3601_s26, 256  ;;  %p4283_p6 = scmp.ne.s32.totalorder %s4255_s18, 0 }
  0xc4   : > { %p3715_p12 = pnand %p4281_p1, %p3673_p3  ;;  %p3047_p0 = scmp.ne.s32.totalorder %s3601_s26, %s3046_s22 }
  0xc5   : > { %s3051_s23 = scalar_lea.hbm %s4259_s10, 512  ;;  %p3052_p7 = scmp.lt.u32.totalorder %s3601_s26, %s4259_s10 }
  0xc6   : > { %p3049_p10 = pnand %p3047_p0, %p4283_p6  ;;  %p3053_p5 = scmp.lt.u32.totalorder %s3051_s23, %s3046_s22 }
  0xc7   : > { %p3055_p2 = scmp.lt.u32.totalorder %s3046_s22, %s3601_s26 }
  0xc8   : > { %s4280_s8 = smov %s4279_s1  ;;  %s3707_s30 = scalar_lea.hbm %s4279_s1, %s2506_s14 }
  0xc9   : > { %p3050_p13 = pneg %p3049_p10  ;;  %p3054_p11 = por %p3053_p5, %p3052_p7 }
  0xcb   : > { %p3056_p3 = por %p3055_p2, %p3054_p11 }
  0xcd   : > { %p3057_p1 = pnand %p3056_p3, %p3050_p13 }
  0xcf   : > { %3060 = shalt.err (!%p3057_p1)
}
  0xd0   : > { %s3061_s12 = scalar_lea.vmem %s3595_s13, 256  ;;  %s3278_s24 = smov [#allocation12]  }
  0xd1   : > { %p3062_p0 = scmp.ne.s32.totalorder %s3595_s13, %s3061_s12  ;;  %s3066_s14 = sshll.u32 %s3278_s24, 4  ;;  %s3067_s14 = int_to_ptr.vmem [resolvable:$false] %s3066_s14 }
  0xd2   : > { %s3068_s15 = scalar_lea.vmem %s3067_s14, 512  ;;  %p3069_p4 = scmp.lt.s32.totalorder %s3595_s13, %s3067_s14 }
  0xd3   : > { %p3064_p10 = pnand %p3062_p0, %p4283_p6  ;;  %p3070_p8 = scmp.lt.s32.totalorder %s3068_s15, %s3061_s12 }
  0xd5   : > { %p3065_p9 = pneg %p3064_p10  ;;  %p3071_p7 = por %p3070_p8, %p3069_p4 }
  0xd7   : > { %p3072_p5 = pnand %p3071_p7, %p3065_p9 }
  0xd9   : > { %3075 = shalt.err (!%p3072_p5)
}
  0xda   : > { %p4284_p13 = scmp.ne.s32.totalorder %s4253_s9, 0  ;;  %s4285_s22 = smov 4  }
  0xdb   : > { %s4286_s5 = smov 64   ;;  %s4287_s2 = sand.u32 1, %s3250_s0  }
  0xdc   : > { %2768 = dma.hbm_to_vmem [thread:$0]  (!%p4284_p13), %s3601_s26, 256, %s3595_s13, %s3556_s29, %s4286_s5, %s4286_s5, %s4285_s22  }
  0xdd   : > { %s682_s23 = scalar_lea.sflag [#allocation5], %s4287_s2  ;;  %s3076_s1 = scalar_lea.hbm %s3707_s30, 128 }
  0xde   : > { %p3077_p4 = scmp.ne.s32.totalorder %s3707_s30, %s3076_s1  ;;  %p3078_p8 = pneg %p3715_p12 }
  0xdf   : > { %s3081_s24 = scalar_lea.hbm %s4280_s8, 256  ;;  %p3082_p2 = scmp.lt.u32.totalorder %s3707_s30, %s4280_s8 }
  0xe0   : > { %p3079_p9 = pnand %p3078_p8, %p3077_p4  ;;  %p3083_p3 = scmp.lt.u32.totalorder %s3081_s24, %s3076_s1 }
  0xe1   : > { %p3085_p0 = scmp.lt.u32.totalorder %s3076_s1, %s3707_s30 }
  0xe2   : > { %p3080_p11 = pneg %p3079_p9  ;;  %p3084_p1 = por %p3083_p3, %p3082_p2 }
  0xe4   : > { %p3086_p10 = por %p3085_p0, %p3084_p1 }
  0xe6   : > { %p3087_p7 = pnand %p3086_p10, %p3080_p11 }
  0xe8   : > { %3090 = shalt.err (!%p3087_p7)
}
  0xe9   : > { %s3091_s29 = scalar_lea.vmem %s3709_s3, 128  ;;  %s3279_s26 = smov [#allocation4]  }
  0xea   : > { %p3092_p5 = scmp.ne.s32.totalorder %s3709_s3, %s3091_s29  ;;  %s3096_s13 = sshll.u32 %s3279_s26, 4  ;;  %s3097_s13 = int_to_ptr.vmem [resolvable:$false] %s3096_s13 }
  0xeb   : > { %s3098_s22 = scalar_lea.vmem %s3097_s13, 256  ;;  %p3099_p13 = scmp.lt.s32.totalorder %s3709_s3, %s3097_s13 }
  0xec   : > { %p3094_p4 = pnand %p3092_p5, %p3078_p8  ;;  %p3100_p2 = scmp.lt.s32.totalorder %s3098_s22, %s3091_s29 }
  0xee   : > { %p3095_p9 = pneg %p3094_p4  ;;  %p3101_p3 = por %p3100_p2, %p3099_p13 }
  0xf0   : > { %p3102_p1 = pnand %p3101_p3, %p3095_p9 }
  0xf2   : > { %3105 = shalt.err (!%p3102_p1)
}
  0xf3   : > { %2762 = dma.hbm_to_vmem [thread:$0]  (!%p3715_p12), %s3707_s30, 128, %s3709_s3, %s682_s23  }
  0xf4   : > { %s821_s5 = scalar_lea.vmem [#allocation15], %s3534_s27  ;;  %s3106_s1 = scalar_lea.hbm %s3593_s7, 16 }
  0xf5   : > { %s828_s2 = sshll.u32 %s821_s5, 4  ;;  %p3107_p8 = scmp.ne.s32.totalorder %s3593_s7, %s3106_s1  ;;  %s829_s2 = int_to_ptr.vmem [resolvable:$true] %s828_s2 }
  0xf6   : > { %s4288_s21 = sld [smem:[#allocation56_spill]]  ;;  %p3115_p5 = scmp.lt.u32.totalorder %s3106_s1, %s3593_s7 }
  0xf7   : > { %p3109_p13 = pnand %p3107_p8, %p4283_p6 }
  0xf9   : > { %p3110_p11 = pneg %p3109_p13 }
  0xfc   : > { %s3111_s24 = scalar_lea.hbm %s4288_s21, 32  ;;  %p3112_p0 = scmp.lt.u32.totalorder %s3593_s7, %s4288_s21 }
  0xfd   : > { %p3113_p10 = scmp.lt.u32.totalorder %s3111_s24, %s3106_s1 }
  0xff   : > { %p3114_p7 = por %p3113_p10, %p3112_p0 }
 0x101   : > { %p3116_p12 = por %p3115_p5, %p3114_p7 }
 0x103   : > { %p3117_p4 = pnand %p3116_p12, %p3110_p11 }
 0x105   : > { %3120 = shalt.err (!%p3117_p4)
}
 0x106   : > { %s3121_s30 = scalar_lea.vmem %s829_s2, 16  ;;  %s3280_s27 = smov [#allocation15]  }
 0x107   : > { %p3122_p9 = scmp.ne.s32.totalorder %s829_s2, %s3121_s30  ;;  %s3126_s3 = sshll.u32 %s3280_s27, 4  ;;  %s3127_s3 = int_to_ptr.vmem [resolvable:$false] %s3126_s3 }
 0x108   : > { %s3128_s23 = scalar_lea.vmem %s3127_s3, 32  ;;  %p3129_p1 = scmp.lt.s32.totalorder %s829_s2, %s3127_s3 }
 0x109   : > { %p3124_p2 = pnand %p3122_p9, %p4283_p6  ;;  %p3130_p8 = scmp.lt.s32.totalorder %s3128_s23, %s3121_s30 }
 0x10b   : > { %p3125_p3 = pneg %p3124_p2  ;;  %p3131_p13 = por %p3130_p8, %p3129_p1 }
 0x10d   : > { %p3132_p0 = pnand %p3131_p13, %p3125_p3 }
 0x10f   : > { %3135 = shalt.err (!%p3132_p0)
}
 0x110   : > { %p4289_p10 = scmp.ne.s32.totalorder %s4253_s9, 0  ;;  %s4290_s29 = sld [smem:[#allocation33_spill]] }
 0x112   : > { %2774 = dma.hbm_to_vmem [thread:$0]  (!%p4289_p10), %s3593_s7, 16, %s829_s2, %s3614_s19  }
 0x116   : > { %p4291_p11 = scmp.ne.s32.totalorder %s4290_s29, 0 }
 0x118   : > { %863 = sbr.rel (%p4291_p11) target bundleno = 3878 (0xf26), region = 108 }
 0x11f   : > { %s3793_s18 = sand.u32 1, %s3246_s4   ;;  %p4292_p6 = scmp.ne.s32.totalorder %s4275_s20, 0 }
 0x120   : > { %s2516_s26 = sshll.u32 %s3793_s18, 3  ;;  %s866_s13 = scalar_lea.sflag [#allocation5], %s3793_s18 }
 0x121   : > { %s3797_s22 = scalar_lea.vmem [#allocation4], %s2516_s26 }
 0x122   : > { %3209 = dma.done.wait (%p4292_p6), %s866_s13, 128  }
 0x123   : > { %3211 = vsyncadd (%p4292_p6), %s866_s13, 4294967168  ;;  %p4293_p7 = scmp.eq.s32.totalorder %s3464_s25, 0 }
 0x125   : > { %3213 = dma.done.wait (%p4293_p7), [#allocation8], 32   ;;  %p4294_p5 = pmov %p4293_p7 }
 0x126   : > { %s4295_s9 = sld [smem:[#allocation22_spill]]  ;;  %s4296_s7 = sld [smem:[#allocation32_spill]] }
 0x127   : > { %3215 = vsyncadd (%p4294_p5), [#allocation8], 4294967264  ;;  %s882_s19 = sand.u32 1, %s3464_s25  }
 0x128   : > { %s883_s2 = scalar_lea.sflag [#allocation11], %s882_s19 }
 0x12c   : > { %s3809_s5 = sand.u32 1, %s4295_s9   ;;  %p4297_p12 = scmp.ne.s32.totalorder %s4296_s7, 0 }
 0x12e   : > { %3217 = dma.done.wait (%p4297_p12), %s883_s2, 272  }
 0x12f   : > { %3219 = vsyncadd (%p4297_p12), %s883_s2, 4294967024  ;;  %s2519_s20 = sshll.u32 %s3809_s5, 4  ;;  %s900_s12 = scalar_lea.sflag [#allocation14], %s882_s19 }
 0x130   : > { %s3817_s17 = scalar_lea.vmem [#allocation12], %s2519_s20  ;;  %s3819_s21 = scalar_lea.vmem [#allocation13], %s2519_s20 }
 0x131   : > { %4298 = sst [smem:[#allocation40_spill]] %s3819_s21 }
 0x132   : > { %3221 = dma.done.wait (%p4297_p12), %s900_s12, 272  }
 0x133   : > { %3223 = vsyncadd (%p4297_p12), %s900_s12, 4294967024  ;;  %s4299_s25 = sld [smem:[#allocation28_spill]]  ;;  %s4300_s24 = sld [smem:[#allocation27_spill]] }
 0x134   : > { %s4303_s2 = sld [smem:[#allocation45_spill]]  ;;  %s4304_s30 = sld [smem:[#allocation47_spill]] }
 0x135   : > { %s4305_s16 = sld [smem:[#allocation49_spill]]  ;;  %s4311_s3 = sld [smem:[#allocation58_spill]] }
 0x136   : > { %s4312_s13 = sld [smem:[#allocation59_spill]]  ;;  %s911_s12 = scalar_lea.vmem [#allocation15], %s3809_s5 }
 0x137   : > { %s1035_s15 = scalar_lea.vmem [#allocation16], %s3793_s18 }
 0x139   : > { %p1036_p4 = scmp.lt.s32.totalorder %s4299_s25, 1  ;;  %p1039_p9 = scmp.lt.s32.totalorder %s4300_s24, 1 }
 0x13a   : > { %p2529_p2 = scmp.ne.s32.totalorder %s4300_s24, 0 }
 0x13b   : > { %s4358_s25 = smov (!%p1036_p4, %s4299_s25), 1  ;;  %v1088_v0 = vld [vmem:[%s3797_s22] sm:$0xff] (!%p2529_p2)  ;;  %vm1091_vm0 = vcmask (!%p2529_p2), 261120   ;;  %v2530_v11 = vld [vmem:[#allocation7] ss:$0 sm:$0xff] (!%p2529_p2) }
 0x13c   : > { %s3831_s14 = scalar_select %p1039_p9, %s4300_s24, 1 }
 0x13d   : > { %v1092_v1 = vsel (!%p2529_p2), %vm1091_vm0, %v1088_v0, 0.0  ;;  %v2531_v13 = vld [vmem:[#allocation9] ss:$0 sm:$0xff] (!%p2529_p2) }
 0x13e   : > { %s2581_s23 = sshll.u32 %s3831_s14, 4  ;;  %s2584_s21 = sshll.u32 %s3831_s14, 5  ;;  %1093 = vadd.xlane.f32.xlu0 (!%p2529_p2), %v1092_v1 }
 0x13f   : > { %s3845_s20 = scalar_lea.vmem %s4303_s2, %s2581_s23  ;;  %s3850_s1 = scalar_lea.vmem %s4304_s30, %s2581_s23 }
 0x140   : > { %s3855_s27 = scalar_lea.vmem %s4305_s16, %s2581_s23  ;;  %s4309_s30 = sld [smem:[#allocation54_spill]] }
 0x141   : > { %s4310_s16 = sld [smem:[#allocation57_spill]]  ;;  %s1076_s29 = scalar_lea.vmem %s4311_s3, %s3831_s14 }
 0x142   : > { %s1079_s7 = scalar_lea.vmem %s4312_s13, %s3831_s14  ;;  %s4313_s2 = sld [smem:[#allocation60_spill]] }
 0x143   : > { %1087 = sbr.rel (%p2529_p2) target bundleno = 631 (0x277), region = 140 }
 0x146   : > { %s1068_s11 = scalar_lea.vmem %s4309_s30, %s3831_s14 }
 0x147   : > { %s3877_s23 = scalar_lea.vmem %s4310_s16, %s2584_s21 }
 0x148   : > { %s1082_s6 = scalar_lea.vmem %s4313_s2, %s3831_s14 }
 0x1cb   : > { %v1094_v2 = vpop.xlane.xlu0 %1093 }
 0x1cc   : > { %v1096_v3 = vmul.f32 0.03125, %v1094_v2 }
 0x1ce   : > { %v1097_v4 = vsub.f32 %v1088_v0, %v1096_v3 }
 0x1d0   : > { %v1098_v5 = vmul.f32 %v1097_v4, %v1097_v4 }
 0x1d2   : > { %v1099_v6 = vsel %vm1091_vm0, %v1098_v5, 0.0 }
 0x1d3   : > { %1100 = vadd.xlane.f32.xlu0 %v1099_v6 }
 0x260   : > { %v1101_v7 = vpop.xlane.xlu0 %1100 }
 0x261   : > { %v1102_v8 = vmul.f32 0.03125, %v1101_v7 }
 0x263   : > { %v1103_v9 = vadd.f32 1e-12, %v1102_v8 }
 0x265   : > { %2890 = vrsqrt.f32 %v1103_v9 }
 0x26f   : > { %v2891_v10 = vpop.eup %2890 }
 0x270   : > { %v1105_v12 = vmul.f32 %v2891_v10, %v1097_v4 }
 0x272   : > { %v1112_v14 = vmul.f32 %v2530_v11, %v1105_v12 }
 0x274   : > { %v1119_v15 = vadd.f32 %v2531_v13, %v1112_v14 }
 0x276   : > { %1120 = vst.msk [vmem:[#allocation2] sm:$0xff] %vm1091_vm0, %v1119_v15 }
 0x277 PF: > { %v2892_v16 = vld [vmem:[%s3850_s1] sm:$0xff]   ;;  %v3281_v17 = vmov 0.0   ;;  %v2894_v19 = vld [vmem:[%s3850_s1 + $0x8] sm:$0xff]   ;;  %vm3282_vm1 = vmmov 0   ;;  %vm1146_vm2 = vcmask 261120   ;;  %s4314_s21 = sld [smem:[#allocation48_spill]] }
 0x278   : > { %2632 = vmatprep.subr.bf16.mxu1 %v3281_v17  ;;  %2624 = vmatprep.subr.bf16.mxu0 %v3281_v17  ;;  %v2893_v18 = vld [vmem:[%s3845_s20] sm:$0xff]   ;;  %v2895_v21 = vld [vmem:[%s3845_s20 + $0x8] sm:$0xff]   ;;  %s4316_s20 = scalar_lea.vmem [#allocation10], %s3809_s5  ;;  %vm1320_vm3 = vcmask 64512   ;;  %s3283_s30 = smov 112   ;;  %vm1390_vm4 = vcmask 1043456  }
 0x279   : > { %2633 = vmatpush3.bf16.msra.mxu1 %v2892_v16  ;;  %2636 = vmatprep.mubr.msk.bf16.mxu1 %vm3282_vm1, %v3281_v17  ;;  %v2532_v24 = vld [vmem:[%s4316_s20] ss:$0 sm:$0xff]  ;;  %s3284_s10 = smov 120   ;;  %s3285_s8 = smov 104   ;;  %v2897_v39 = vld [vmem:[%s3855_s27 + $0x8] sm:$0xff]   ;;  %vm1554_vm5 = vcmask 130112  }
 0x27a   : > { %2634 = vmatprep.subr.bf16.mxu1 %v3281_v17  ;;  %2625 = vmatpush3.bf16.msra.mxu0 %v2893_v18  ;;  %v2896_v38 = vld [vmem:[%s3855_s27] sm:$0xff]   ;;  %s4317_s0 = sld [smem:[#allocation42_spill]]  ;;  %s3287_s19 = smov 16   ;;  %vm1672_vm6 = vcmask 195712   ;;  %vm1790_vm7 = vcmask 261312   ;;  %vm2007_vm8 = vcmask 523264  }
 0x27b   : > { %2626 = vmatprep.subr.bf16.mxu0 %v3281_v17  ;;  %2628 = vmatprep.mubr.msk.bf16.mxu0 %vm3282_vm1, %v3281_v17  ;;  %s4319_s9 = sld [smem:[#allocation50_spill]]  ;;  %s3288_s28 = smov 24  }
 0x27c   : > { %s4321_s22 = sld [smem:[#allocation52_spill]] }
 0x27d   : > { %v3906_v20 = vld [vmem:[#allocation2] sm:$0xff]  ;;  %2635 = vmatpush3.bf16.msra.mxu1 %v2894_v19  ;;  %s4315_s24 = scalar_lea.vmem %s4314_s21, %s3831_s14  ;;  %s4323_s21 = sld [smem:[#allocation40_spill]] }
 0x27e   : > { %v1122_v22 = vpack.c.bf16 %v3906_v20, %v3906_v20  ;;  %2627 = vmatpush3.bf16.msra.mxu0 %v2895_v21  ;;  %2648 = vmatprep.subr.bf16.mxu1 %v3281_v17  ;;  %v2536_v23 = vld [vmem:[%s4315_s24] ss:$0 sm:$0xff] }
 0x27f   : > { %2640 = vmatprep.subr.bf16.mxu0 %v3281_v17 }
 0x280   : > { %2637 = vmatmul.mubr.msk.bf16.vlgmr.msra.gmra.mrb[0].mxu1 %vm1146_vm2, %v1122_v22  ;;  %s4318_s4 = scalar_lea.vmem %s4317_s0, %s4358_s25  ;;  %s3286_s25 = smov 8  }
 0x281   : > { %2629 = vmatmul.mubr.msk.bf16.vlgmr.msra.gmra.mrb[0].mxu0 %vm1146_vm2, %v1122_v22  ;;  %2650 = vmatprep.mubr.msk.bf16.mxu1 %vm3282_vm1, %v3281_v17  ;;  %v2545_v50 = vld [vmem:[%s4318_s4] ss:$0 sm:$0xff]  ;;  %s4320_s13 = scalar_lea.vmem %s4319_s9, %s3831_s14  ;;  %s4330_s9 = sld [smem:[#allocation27_spill]] }
 0x282   : > { %2644 = vmatprep.mubr.msk.bf16.mxu0 %vm3282_vm1, %v3281_v17  ;;  %2641 = vmatpush3.bf16.msra.mxu0 %v2896_v38  ;;  %v2540_v57 = vld [vmem:[%s4320_s13] ss:$0 sm:$0xff]  ;;  %s4322_s1 = scalar_lea.vmem %s4321_s22, %s3831_s14 }
 0x283   : > { %2642 = vmatprep.subr.bf16.mxu0 %v3281_v17 }
 0x286   : > { %2643 = vmatpush3.bf16.msra.mxu0 %v2897_v39 }
 0x287   : > { %2654 = vmatprep.subr.bf16.mxu0 %v3281_v17  ;;  %p2571_p3 = scmp.ne.s32.totalorder %s4330_s9, 1 }
 0x288   : > { %vm3290_vm9 = vmmov (!%p2571_p3), 0   ;;  %s3291_s2 = smov (!%p2571_p3), 16   ;;  %s3293_s22 = smov (!%p2571_p3), 80   ;;  %vm2179_vm13 = vcmask (!%p2571_p3), 122880  }
 0x289   : > { %2645 = vmatmul.mubr.msk.bf16.vlgmr.msra.gmra.mrb[4].mxu0 %vm1146_vm2, %v1122_v22 }
 0x28a   : > { %2656 = vmatprep.mubr.msk.bf16.mxu0 %vm3282_vm1, %v3281_v17 }
 0x353   : > { %v1247_v25 = vpop.f32.mrb[0].mxu1 }
 0x354   : > { %v1248_v26 = vadd.f32 %v2536_v23, %v1247_v25  ;;  %v2638_v27 = vpop.f32.mrb[1].mxu1  ;;  %v1184_v28 = vpop.f32.mrb[0].mxu0 }
 0x355   : > { %v1250_v29 = vpop.f32.mrb[2].mxu1  ;;  %v1185_v30 = vadd.f32 %v2532_v24, %v1184_v28  ;;  %v2630_v31 = vpop.f32.mrb[1].mxu0 }
 0x356   : > { %v1318_v32 = vpack.c.bf16 %v1248_v26, %v1248_v26  ;;  %v2639_v33 = vpop.f32.mrb[3].mxu1  ;;  %v1187_v34 = vpop.f32.mrb[2].mxu0 }
 0x357   : > { %v2631_v35 = vpop.f32.mrb[3].mxu0  ;;  %v1317_v36 = vpack.c.bf16 %v1185_v30, %v1185_v30 }
 0x358   : > { %1558 = vrot.lane.b32.xlu1 %v1318_v32, %s3283_s30  ;;  %1439 = vrot.lane.b32.xlu0 %v1318_v32, %s3284_s10  ;;  %v1325_v37 = vsel %vm1320_vm3, %v1318_v32, 0 }
 0x359   : > { %2649 = vmatpush3.bf16.xpose.msra.mxu1 %v1325_v37 }
 0x35a   : > { %2660 = vmatprep.subr.bf16.mxu1 %v3281_v17 }
 0x35c   : > { %1556 = vrot.lane.b32.xlu1 %v1317_v36, %s3283_s30  ;;  %1436 = vrot.lane.b32.xlu0 %v1317_v36, %s3284_s10  ;;  %v1310_v58 = vpop.f32.mrb[4].mxu0 }
 0x35d   : > { %v1311_v59 = vadd.f32 %v2540_v57, %v1310_v58  ;;  %v2646_v60 = vpop.f32.mrb[5].mxu0 }
 0x35e   : > { %v1313_v61 = vpop.f32.mrb[6].mxu0 }
 0x35f   : > { %v1319_v62 = vpack.c.bf16 %v1311_v59, %v1311_v59  ;;  %v2647_v63 = vpop.f32.mrb[7].mxu0 }
 0x360   : > { %1674 = vrot.lane.b32.xlu1 %v1317_v36, %s3285_s8  ;;  %1676 = vrot.lane.b32.xlu0 %v1318_v32, %s3285_s8 }
 0x361   : > { %2651 = vmatmul.mubr.msk.bf16.vlgmr.msra.gmra.mrb[4].mxu1 %vm1320_vm3, %v1317_v36  ;;  %v1392_v0 = vsel %vm1390_vm4, %v1319_v62, 0 }
 0x362   : > { %2662 = vmatprep.mubr.msk.bf16.mxu1 %vm3282_vm1, %v3281_v17  ;;  %2655 = vmatpush3.bf16.msra.mxu0 %v1392_v0 }
 0x363   : > { %2666 = vmatprep.subr.bf16.mxu0 %v3281_v17 }
 0x3ca   : > { %v1440_v40 = vpop.permute.xlu0 %1439  ;;  %v1559_v42 = vpop.permute.xlu1 %1558 }
 0x3cb   : > { %v1445_v41 = vsel %vm1320_vm3, %v1440_v40, 0  ;;  %v1564_v44 = vsel %vm1320_vm3, %v1559_v42, 0 }
 0x3cc   : > { %2661 = vmatpush3.bf16.xpose.msra.mxu1 %v1445_v41 }
 0x3cd   : > { %2672 = vmatprep.subr.bf16.mxu1 %v3281_v17 }
 0x3ce   : > { %v1437_v43 = vpop.permute.xlu0 %1436  ;;  %v1557_v46 = vpop.permute.xlu1 %1556 }
 0x3d2   : > { %v1677_v45 = vpop.permute.xlu0 %1676  ;;  %v1675_v48 = vpop.permute.xlu1 %1674 }
 0x3d3   : > { %2663 = vmatmul.mubr.msk.bf16.vlgmr.msra.gmra.mrb[8].mxu1 %vm1320_vm3, %v1437_v43  ;;  %v1682_v47 = vsel %vm1320_vm3, %v1677_v45, 0 }
 0x3d4   : > { %2673 = vmatpush3.bf16.xpose.msra.mxu1 %v1564_v44  ;;  %2674 = vmatprep.mubr.msk.bf16.mxu1 %vm3282_vm1, %v3281_v17 }
 0x3d5   : > { %2684 = vmatprep.subr.bf16.mxu1 %v3281_v17 }
 0x3db   : > { %2675 = vmatmul.mubr.msk.bf16.vlgmr.msra.gmra.mrb[12].mxu1 %vm1320_vm3, %v1557_v46 }
 0x3dc   : > { %2685 = vmatpush3.bf16.xpose.msra.mxu1 %v1682_v47  ;;  %2686 = vmatprep.mubr.msk.bf16.mxu1 %vm3282_vm1, %v3281_v17 }
 0x3dd   : > { %2696 = vmatprep.subr.bf16.mxu1 %v3281_v17 }
 0x3e3   : > { %2687 = vmatmul.mubr.msk.bf16.vlgmr.msra.gmra.mrb[16].mxu1 %vm1320_vm3, %v1675_v48 }
 0x3e4   : > { %2700 = vmatprep.mubr.msk.bf16.mxu1 %vm3282_vm1, %v3281_v17 }
 0x434   : > { %v1361_v49 = vpop.f32.mrb[4].mxu1 }
 0x435   : > { %v1367_v51 = vmul.f32 0.35355338, %v1361_v49  ;;  %v2652_v52 = vpop.f32.mrb[5].mxu1 }
 0x436   : > { %v1364_v53 = vpop.f32.mrb[6].mxu1 }
 0x437   : > { %v2653_v54 = vpop.f32.mrb[7].mxu1  ;;  %v1374_v55 = vadd.f32 %v2545_v50, %v1367_v51 }
 0x439   : > { %v1375_v56 = vsel %vm1320_vm3, %v1374_v55, -inf }
 0x43a   : > { %1376 = vmax.xlane.f32.xlu0 %v1375_v56 }
 0x4a6   : > { %v1481_v1 = vpop.f32.mrb[8].mxu1 }
 0x4a7   : > { %v1487_v2 = vmul.f32 0.35355338, %v1481_v1  ;;  %v2664_v3 = vpop.f32.mrb[9].mxu1 }
 0x4a8   : > { %v1484_v4 = vpop.f32.mrb[10].mxu1 }
 0x4a9   : > { %v2665_v5 = vpop.f32.mrb[11].mxu1  ;;  %v1488_v6 = vadd.f32 %v2545_v50, %v1487_v2 }
 0x4ab   : > { %v1489_v7 = vsel %vm1320_vm3, %v1488_v6, -inf }
 0x4ac   : > { %1490 = vmax.xlane.f32.xlu1 %v1489_v7 }
 0x4ae   : > { %v1600_v8 = vpop.f32.mrb[12].mxu1 }
 0x4af   : > { %v1606_v9 = vmul.f32 0.35355338, %v1600_v8  ;;  %v2676_v10 = vpop.f32.mrb[13].mxu1 }
 0x4b0   : > { %v1603_v11 = vpop.f32.mrb[14].mxu1  ;;  %v2898_v10 = vld [vmem:[%s3817_s17] sm:$0xff]  }
 0x4b1   : > { %v2677_v12 = vpop.f32.mrb[15].mxu1  ;;  %v1607_v13 = vadd.f32 %v2545_v50, %v1606_v9  ;;  %2697 = vmatpush3.bf16.msra.mxu1 %v2898_v10  ;;  %v2899_v11 = vld [vmem:[%s3817_s17 + $0x8] sm:$0xff]   ;;  %s4332_s17 = sld [smem:[#allocation62_spill]] (!%p2571_p3) }
 0x4b2   : > { %2698 = vmatprep.subr.bf16.mxu1 %v3281_v17 }
 0x4b3   : > { %v1608_v14 = vsel %vm1320_vm3, %v1607_v13, -inf }
 0x4b4   : > { %1609 = vmax.xlane.f32.xlu0 %v1608_v14 }
 0x4b5   : > { %2699 = vmatpush3.bf16.msra.mxu1 %v2899_v11 }
 0x4b6   : > { %v1718_v15 = vpop.f32.mrb[16].mxu1  ;;  %2712 = vmatprep.subr.bf16.mxu1 %v3281_v17 }
 0x4b7   : > { %v1724_v16 = vmul.f32 0.35355338, %v1718_v15  ;;  %v2688_v18 = vpop.f32.mrb[17].mxu1 }
 0x4b8   : > { %v1721_v19 = vpop.f32.mrb[18].mxu1 }
 0x4b9   : > { %v2689_v21 = vpop.f32.mrb[19].mxu1  ;;  %v1725_v22 = vadd.f32 %v2545_v50, %v1724_v16 }
 0x4bb   : > { %v1726_v23 = vsel %vm1320_vm3, %v1725_v22, -inf }
 0x4bc   : > { %1727 = vmax.xlane.f32.xlu0 %v1726_v23 }
 0x4c7   : > { %v1377_v24 = vpop.xlane.xlu0 %1376 }
 0x4c8   : > { %v1378_v25 = vsub.f32 %v1374_v55, %v1377_v24 }
 0x4ca   : > { %v1379_v26 = vmul.f32 1.442695, %v1378_v25 }
 0x4cc   : > { %2906 = vpow2.f32 %v1379_v26 }
 0x4d6   : > { %v2907_v27 = vpop.eup %2906 }
 0x4d7   : > { %v1381_v28 = vsel %vm1320_vm3, %v2907_v27, 0.0 }
 0x4d8   : > { %1382 = vadd.xlane.f32.xlu1 %v1381_v28 }
 0x4e9   : > { %1502 = vrot.lane.b32.xlu1 %v1319_v62, %s3284_s10 }
 0x539   : > { %v1491_v29 = vpop.xlane.xlu1 %1490 }
 0x53a   : > { %v1492_v30 = vsub.f32 %v1488_v6, %v1491_v29 }
 0x53c   : > { %v1493_v31 = vmul.f32 1.442695, %v1492_v30 }
 0x53e   : > { %2908 = vpow2.f32 %v1493_v31 }
 0x541   : > { %v1610_v32 = vpop.xlane.xlu0 %1609 }
 0x542   : > { %v1611_v33 = vsub.f32 %v1607_v13, %v1610_v32 }
 0x544   : > { %v1612_v34 = vmul.f32 1.442695, %v1611_v33 }
 0x546   : > { %2910 = vpow2.f32 %v1612_v34 }
 0x548   : > { %v2909_v35 = vpop.eup %2908 }
 0x549   : > { %v1728_v36 = vpop.xlane.xlu0 %1727  ;;  %v1495_v37 = vsel %vm1320_vm3, %v2909_v35, 0.0 }
 0x54a   : > { %v1729_v38 = vsub.f32 %v1725_v22, %v1728_v36  ;;  %1496 = vadd.xlane.f32.xlu0 %v1495_v37 }
 0x54c   : > { %v1730_v39 = vmul.f32 1.442695, %v1729_v38 }
 0x54e   : > { %2912 = vpow2.f32 %v1730_v39 }
 0x550   : > { %v2911_v40 = vpop.eup %2910 }
 0x551   : > { %v1614_v41 = vsel %vm1320_vm3, %v2911_v40, 0.0 }
 0x552   : > { %1615 = vadd.xlane.f32.xlu1 %v1614_v41  ;;  %v2901_v41 = vld [vmem:[%s4323_s21 + $0x8] sm:$0xff]  }
 0x558   : > { %v2913_v42 = vpop.eup %2912 }
 0x559   : > { %v1732_v43 = vsel %vm1320_vm3, %v2913_v42, 0.0 }
 0x55a   : > { %1733 = vadd.xlane.f32.xlu0 %v1732_v43 }
 0x563   : > { %1738 = vrot.lane.b32.xlu1 %v1319_v62, %s3285_s8 }
 0x565   : > { %v1383_v44 = vpop.xlane.xlu1 %1382 }
 0x566   : > { %2914 = vrcp.f32 %v1383_v44 }
 0x569   : > { %v1503_v46 = vpop.permute.xlu1 %1502 }
 0x56a   : > { %v1508_v49 = vsel %vm1390_vm4, %v1503_v46, 0 }
 0x570   : > { %v2915_v45 = vpop.eup %2914  ;;  %1620 = vrot.lane.b32.xlu0 %v1319_v62, %s3283_s30  ;;  %s4324_s30 = sld [smem:[#allocation53_spill]] }
 0x571   : > { %v1385_v47 = vmul.f32 %v2915_v45, %v2907_v27  ;;  %v2553_v27 = vld [vmem:[%s4322_s1] ss:$0 sm:$0xff] }
 0x573   : > { %v1386_v48 = vpack.c.bf16 %v1385_v47, %v1385_v47  ;;  %v2558_v47 = vld [vmem:[%s1068_s11] ss:$0 sm:$0xff] }
 0x575   : > { %2657 = vmatmul.mubr.msk.bf16.vlgmr.msra.gmra.mrb[8].mxu0 %vm1320_vm3, %v1386_v48 }
 0x576   : > { %2667 = vmatpush3.bf16.msra.mxu0 %v1508_v49  ;;  %2668 = vmatprep.mubr.msk.bf16.mxu0 %vm3282_vm1, %v3281_v17  ;;  %s4325_s10 = scalar_lea.vmem %s4324_s30, %s3831_s14 }
 0x577   : > { %2678 = vmatprep.subr.bf16.mxu0 %v3281_v17  ;;  %v2557_v45 = vld [vmem:[%s4325_s10] ss:$0 sm:$0xff] }
 0x5d7   : > { %v1497_v50 = vpop.xlane.xlu0 %1496 }
 0x5d8   : > { %2916 = vrcp.f32 %v1497_v50 }
 0x5df   : > { %v1616_v51 = vpop.xlane.xlu1 %1615 }
 0x5e0   : > { %2918 = vrcp.f32 %v1616_v51  ;;  %v2902_v51 = vld [vmem:[%s3877_s23] sm:$0xff]  }
 0x5e2   : > { %v2917_v52 = vpop.eup %2916 }
 0x5e3   : > { %v1499_v53 = vmul.f32 %v2917_v52, %v2909_v35  ;;  %v1739_v60 = vpop.permute.xlu1 %1738  ;;  %v2903_v52 = vld [vmem:[%s3877_s23 + $0x8] sm:$0xff]  }
 0x5e4   : > { %v1744_v62 = vsel %vm1390_vm4, %v1739_v60, 0 }
 0x5e5   : > { %v1500_v54 = vpack.c.bf16 %v1499_v53, %v1499_v53  ;;  %v2904_v53 = vld [vmem:[%s3877_s23 + $0x10] sm:$0xff]  }
 0x5e7   : > { %v1734_v55 = vpop.xlane.xlu0 %1733  ;;  %2669 = vmatmul.mubr.msk.bf16.vlgmr.msra.gmra.mrb[12].mxu0 %vm1320_vm3, %v1500_v54  ;;  %v2905_v54 = vld [vmem:[%s3877_s23 + $0x18] sm:$0xff]  }
 0x5e8   : > { %2920 = vrcp.f32 %v1734_v55  ;;  %2680 = vmatprep.mubr.msk.bf16.mxu0 %vm3282_vm1, %v3281_v17  ;;  %v2559_v55 = vld [vmem:[%s911_s12] ss:$0 sm:$0xff] }
 0x5ea   : > { %v2919_v56 = vpop.eup %2918 }
 0x5eb   : > { %v1618_v57 = vmul.f32 %v2919_v56, %v2911_v40  ;;  %v1621_v58 = vpop.permute.xlu0 %1620  ;;  %v2900_v40 = vld [vmem:[%s4323_s21] sm:$0xff]  }
 0x5ec   : > { %v1626_v59 = vsel %vm1390_vm4, %v1621_v58, 0 }
 0x5ed   : > { %2679 = vmatpush3.bf16.msra.mxu0 %v1626_v59  ;;  %v1619_v61 = vpack.c.bf16 %v1618_v57, %v1618_v57 }
 0x5ee   : > { %2690 = vmatprep.subr.bf16.mxu0 %v3281_v17 }
 0x5f0   : > { %2681 = vmatmul.mubr.msk.bf16.vlgmr.msra.gmra.mrb[16].mxu0 %vm1320_vm3, %v1619_v61 }
 0x5f1   : > { %2691 = vmatpush3.bf16.msra.mxu0 %v1744_v62  ;;  %2692 = vmatprep.mubr.msk.bf16.mxu0 %vm3282_vm1, %v3281_v17 }
 0x5f2   : > { %v2921_v63 = vpop.eup %2920  ;;  %2704 = vmatprep.subr.bf16.mxu0 %v3281_v17 }
 0x5f3   : > { %v1736_v0 = vmul.f32 %v2921_v63, %v2913_v42 }
 0x5f5   : > { %v1737_v1 = vpack.c.bf16 %v1736_v0, %v1736_v0 }
 0x5f8   : > { %2693 = vmatmul.mubr.msk.bf16.vlgmr.msra.gmra.mrb[20].mxu0 %vm1320_vm3, %v1737_v1 }
 0x5f9   : > { %2708 = vmatprep.mubr.msk.bf16.mxu0 %vm3282_vm1, %v3281_v17  ;;  %2705 = vmatpush3.bf16.msra.mxu0 %v2900_v40 }
 0x5fa   : > { %2706 = vmatprep.subr.bf16.mxu0 %v3281_v17 }
 0x5fd   : > { %2707 = vmatpush3.bf16.msra.mxu0 %v2901_v41 }
 0x648   : > { %v1428_v2 = vpop.f32.mrb[8].mxu0 }
 0x649   : > { %1434 = vst.msk [vmem:[#allocation3] sm:$0xff] %vm1320_vm3, %v1428_v2  ;;  %v2658_v3 = vpop.f32.mrb[9].mxu0 }
 0x64a   : > { %v1431_v4 = vpop.f32.mrb[10].mxu0 }
 0x64b   : > { %v2659_v5 = vpop.f32.mrb[11].mxu0 }
 0x6ba   : > { %v1544_v6 = vpop.f32.mrb[12].mxu0 }
 0x6bb   : > { %1551 = vrot.lane.b32.xlu1 %v1544_v6, %s3286_s25  ;;  %v2670_v7 = vpop.f32.mrb[13].mxu0  ;;  %v2563_v6 = vld [vmem:[%s1076_s29] ss:$0 sm:$0xff] }
 0x6bc   : > { %v1547_v8 = vpop.f32.mrb[14].mxu0 }
 0x6bd   : > { %v2671_v9 = vpop.f32.mrb[15].mxu0 }
 0x6c3   : > { %v1662_v12 = vpop.f32.mrb[16].mxu0 }
 0x6c4   : > { %1669 = vrot.lane.b32.xlu0 %v1662_v12, %s3287_s19  ;;  %v2682_v13 = vpop.f32.mrb[17].mxu0  ;;  %s4331_s19 = sld [smem:[#allocation61_spill]] (!%p2571_p3) }
 0x6c5   : > { %v1665_v14 = vpop.f32.mrb[18].mxu0 }
 0x6c6   : > { %v2683_v15 = vpop.f32.mrb[19].mxu0 }
 0x6cb   : > { %v1780_v16 = vpop.f32.mrb[20].mxu0 }
 0x6cc   : > { %1787 = vrot.lane.b32.xlu1 %v1780_v16, %s3288_s28  ;;  %v2694_v18 = vpop.f32.mrb[21].mxu0 }
 0x6cd   : > { %v1783_v19 = vpop.f32.mrb[22].mxu0 }
 0x6ce   : > { %v2695_v21 = vpop.f32.mrb[23].mxu0 }
 0x72d   : > { %v1552_v22 = vpop.permute.xlu1 %1551 }
 0x72e   : > { %1555 = vst.msk [vmem:[#allocation3] sm:$0xff] %vm1554_vm5, %v1552_v22 }
 0x736   : > { %v1670_v23 = vpop.permute.xlu0 %1669 }
 0x737   : > { %1673 = vst.msk [vmem:[#allocation3] sm:$0xff] %vm1672_vm6, %v1670_v23 }
 0x73e   : > { %v1788_v24 = vpop.permute.xlu1 %1787 }
 0x73f   : > { %1791 = vst.msk [vmem:[#allocation3] sm:$0xff] %vm1790_vm7, %v1788_v24 }
 0x746   : > { %v1792_v25 = vld [vmem:[#allocation3] sm:$0xff] }
 0x747   : > { %v1793_v26 = vpack.c.bf16 %v1792_v25, %v1792_v25  ;;  %v2569_v25 = vld [vmem:[%s1079_s7] ss:$0 sm:$0xff] }
 0x749   : > { %2701 = vmatmul.mubr.msk.bf16.vlgmr.msra.gmra.mrb[20].mxu1 %vm1146_vm2, %v1793_v26 }
 0x74a   : > { %2720 = vmatprep.mubr.msk.bf16.mxu1 %vm3282_vm1, %v3281_v17  ;;  %2713 = vmatpush3.bf16.msra.mxu1 %v2902_v51 }
 0x74b   : > { %2714 = vmatprep.subr.bf16.mxu1 %v3281_v17 }
 0x74e   : > { %2715 = vmatpush3.bf16.msra.mxu1 %v2903_v52 }
 0x74f   : > { %2716 = vmatprep.subr.bf16.mxu1 %v3281_v17 }
 0x752   : > { %2717 = vmatpush3.bf16.msra.mxu1 %v2904_v53 }
 0x753   : > { %2718 = vmatprep.subr.bf16.mxu1 %v3281_v17 }
 0x756   : > { %2719 = vmatpush3.bf16.msra.mxu1 %v2905_v54 }
 0x81c   : > { %v1854_v28 = vpop.f32.mrb[20].mxu1 }
 0x81d   : > { %v1855_v29 = vadd.f32 %v2553_v27, %v1854_v28  ;;  %v2702_v30 = vpop.f32.mrb[21].mxu1  ;;  %v2570_v27 = vld [vmem:[%s1082_s6] ss:$0 sm:$0xff] }
 0x81e   : > { %v1857_v31 = vpop.f32.mrb[22].mxu1  ;;  %v2928_v30 = vld [vmem:[%s4331_s19] sm:$0xff] (!%p2571_p3)  }
 0x81f   : > { %v2703_v32 = vpop.f32.mrb[23].mxu1  ;;  %v1860_v33 = vadd.f32 %v1855_v29, %v3906_v20  ;;  %v3289_v31 = vmov (!%p2571_p3), 0.0  }
 0x820   : > { %2724 = vmatprep.subr.bf16.mxu0 (!%p2571_p3), %v3289_v31  ;;  %v2929_v32 = vld [vmem:[%s4331_s19 + $0x8] sm:$0xff] (!%p2571_p3)  }
 0x821   : > { %v1863_v34 = vsel %vm1146_vm2, %v1860_v33, 0.0 }
 0x822   : > { %1864 = vadd.xlane.f32.xlu0 %v1863_v34  ;;  %v2572_v34 = vld [vmem:[%s4332_s17] ss:$0 sm:$0xff] (!%p2571_p3) }
 0x8af   : > { %v1865_v35 = vpop.xlane.xlu0 %1864 }
 0x8b0   : > { %v1867_v36 = vmul.f32 0.03125, %v1865_v35 }
 0x8b2   : > { %v1868_v37 = vsub.f32 %v1860_v33, %v1867_v36 }
 0x8b4   : > { %v1869_v38 = vmul.f32 %v1868_v37, %v1868_v37 }
 0x8b6   : > { %v1870_v39 = vsel %vm1146_vm2, %v1869_v38, 0.0 }
 0x8b7   : > { %1871 = vadd.xlane.f32.xlu1 %v1870_v39 }
 0x944   : > { %v1872_v20 = vpop.xlane.xlu1 %1871 }
 0x945   : > { %v1873_v42 = vmul.f32 0.03125, %v1872_v20  ;;  %v3292_v20 = vmov (!%p2571_p3), 0  }
 0x947   : > { %v1874_v43 = vadd.f32 1e-12, %v1873_v42 }
 0x949   : > { %2922 = vrsqrt.f32 %v1874_v43 }
 0x953   : > { %v2923_v44 = vpop.eup %2922 }
 0x954   : > { %v1876_v46 = vmul.f32 %v2923_v44, %v1868_v37 }
 0x956   : > { %v1883_v48 = vmul.f32 %v2557_v45, %v1876_v46 }
 0x958   : > { %v1890_v49 = vadd.f32 %v2558_v47, %v1883_v48 }
 0x95a   : > { %v1891_v50 = vpack.c.bf16 %v1890_v49, %v1890_v49 }
 0x95c   : > { %2709 = vmatmul.mubr.msk.bf16.vlgmr.msra.gmra.mrb[24].mxu0 %vm1146_vm2, %v1891_v50 }
 0x95d   : > { %2725 = vmatpush3.bf16.msra.mxu0 (!%p2571_p3), %v2928_v30  ;;  %2728 = vmatprep.mubr.msk.bf16.mxu0 (!%p2571_p3), %vm3290_vm9, %v3289_v31 }
 0x95e   : > { %2726 = vmatprep.subr.bf16.mxu0 (!%p2571_p3), %v3289_v31 }
 0x961   : > { %2727 = vmatpush3.bf16.msra.mxu0 (!%p2571_p3), %v2929_v32 }
 0xa2f   : > { %v1952_v56 = vpop.f32.mrb[24].mxu0 }
 0xa30   : > { %v1953_v57 = vadd.f32 %v2559_v55, %v1952_v56  ;;  %v2710_v58 = vpop.f32.mrb[25].mxu0 }
 0xa31   : > { %v1955_v59 = vpop.f32.mrb[26].mxu0 }
 0xa32   : > { %v1958_v60 = vmul.f32 %v1953_v57, %v1953_v57  ;;  %v2711_v61 = vpop.f32.mrb[27].mxu0 }
 0xa34   : > { %v1959_v62 = vmul.f32 %v1958_v60, %v1953_v57 }
 0xa36   : > { %v1960_v63 = vmul.f32 0.044715, %v1959_v62 }
 0xa38   : > { %v1961_v0 = vadd.f32 %v1960_v63, %v1953_v57 }
 0xa3a   : > { %v1962_v1 = vmul.f32 0.7978846, %v1961_v0 }
 0xa3c   : > { %2924 = vtanh.f32 %v1962_v1 }
 0xa46   : > { %v2925_v2 = vpop.eup %2924 }
 0xa47   : > { %v1964_v3 = vadd.f32 1.0, %v2925_v2 }
 0xa49   : > { %v1965_v4 = vmul.f32 0.5, %v1964_v3 }
 0xa4b   : > { %v1966_v17 = vmul.f32 %v1965_v4, %v1953_v57 }
 0xa4d   : > { %v1967_v5 = vpack.c.bf16 %v1966_v17, %v1966_v17 }
 0xa4f   : > { %2721 = vmatmul.mubr.msk.bf16.vlgmr.msra.gmra.mrb[24].mxu1 %vm2007_vm8, %v1967_v5 }
 0xb22   : > { %v2045_v7 = vpop.f32.mrb[24].mxu1 }
 0xb23   : > { %v2046_v8 = vadd.f32 %v2563_v6, %v2045_v7  ;;  %v2722_v9 = vpop.f32.mrb[25].mxu1 }
 0xb24   : > { %v2048_v10 = vpop.f32.mrb[26].mxu1 }
 0xb25   : > { %v2723_v11 = vpop.f32.mrb[27].mxu1  ;;  %v2051_v12 = vadd.f32 %v2046_v8, %v1890_v49 }
 0xb27   : > { %v2054_v13 = vsel %vm1146_vm2, %v2051_v12, 0.0 }
 0xb28   : > { %2055 = vadd.xlane.f32.xlu0 %v2054_v13 }
 0xbb5   : > { %v2056_v14 = vpop.xlane.xlu0 %2055 }
 0xbb6   : > { %v2057_v15 = vmul.f32 0.03125, %v2056_v14 }
 0xbb8   : > { %v2058_v16 = vsub.f32 %v2051_v12, %v2057_v15 }
 0xbba   : > { %v2059_v18 = vmul.f32 %v2058_v16, %v2058_v16 }
 0xbbc   : > { %v2060_v19 = vsel %vm1146_vm2, %v2059_v18, 0.0 }
 0xbbd   : > { %2061 = vadd.xlane.f32.xlu0 %v2060_v19 }
 0xc4a   : > { %v2062_v21 = vpop.xlane.xlu0 %2061 }
 0xc4b   : > { %v2063_v22 = vmul.f32 0.03125, %v2062_v21 }
 0xc4d   : > { %v2064_v23 = vadd.f32 1e-12, %v2063_v22 }
 0xc4f   : > { %2926 = vrsqrt.f32 %v2064_v23 }
 0xc59   : > { %v2927_v24 = vpop.eup %2926 }
 0xc5a   : > { %v2066_v26 = vmul.f32 %v2927_v24, %v2058_v16  ;;  %2085 = sbr.rel (%p2571_p3) target bundleno = 3851 (0xf0b), region = 144 }
 0xc5c   : > { %v2073_v28 = vmul.f32 %v2569_v25, %v2066_v26 }
 0xc5e   : > { %v2080_v29 = vadd.f32 %v2570_v27, %v2073_v28 }
 0xc60   : > { %2081 = vst.msk [vmem:[#allocation2] sm:$0xff] %vm1146_vm2, %v2080_v29  ;;  %v2086_v33 = vpack.c.bf16 (!%p2571_p3), %v2080_v29, %v2080_v29 }
 0xc62   : > { %2729 = vmatmul.mubr.msk.bf16.vlgmr.msra.gmra.mrb[0].mxu0 %vm1146_vm2, %v2086_v33 }
 0xd35   : > { %v2147_v35 = vpop.f32.mrb[0].mxu0 }
 0xd36   : > { %v2148_v36 = vadd.f32 %v2572_v34, %v2147_v35  ;;  %v2730_v37 = vpop.f32.mrb[1].mxu0 }
 0xd37   : > { %v2150_v38 = vpop.f32.mrb[2].mxu0 }
 0xd38   : > { %2154 = vrot.lane.b32.xlu0 %v2148_v36, %s3291_s2  ;;  %v2731_v39 = vpop.f32.mrb[3].mxu0 }
 0xdaa   : > { %v2155_v40 = vpop.permute.xlu0 %2154 }
 0xdab   : > { %vm2157_vm10 = vcmp.gt.f32.partialorder %v2148_v36, %v2155_v40 }
 0xdac   : > { %v2159_v41 = vsel %vm2157_vm10, %v2148_v36, %v2155_v40  ;;  %v2158_v42 = vsel %vm2157_vm10, 1, %v3292_v20 }
 0xdad   : > { %2161 = vrot.lane.b32.xlu0 %v2159_v41, %s3291_s2  ;;  %2165 = vrot.lane.b32.xlu1 %v2158_v42, %s3291_s2 }
 0xe1f   : > { %v2162_v43 = vpop.permute.xlu0 %2161  ;;  %v2166_v44 = vpop.permute.xlu1 %2165 }
 0xe20   : > { %vm2164_vm11 = vcmp.gt.f32.partialorder %v2148_v36, %v2162_v43 }
 0xe21   : > { %v2167_v45 = vsel %vm2164_vm11, 2, %v2166_v44  ;;  %v2168_v46 = vsel %vm2164_vm11, %v2148_v36, %v2162_v43 }
 0xe22   : > { %2170 = vrot.lane.b32.xlu1 %v2168_v46, %s3291_s2  ;;  %2174 = vrot.lane.b32.xlu0 %v2167_v45, %s3291_s2 }
 0xe94   : > { %v2175_v47 = vpop.permute.xlu0 %2174  ;;  %v2171_v48 = vpop.permute.xlu1 %2170 }
 0xe95   : > { %vm2173_vm12 = vcmp.gt.f32.partialorder %v2148_v36, %v2171_v48 }
 0xe96   : > { %v2176_v49 = vsel %vm2173_vm12, 3, %v2175_v47 }
 0xe97   : > { %2177 = vrot.lane.b32.xlu1 %v2176_v49, %s3293_s22 }
 0xf09   : > { %v2178_v50 = vpop.permute.xlu1 %2177 }
 0xf0a   : > { %2180 = vst.msk [vmem:[%s1035_s15] sm:$0x1] %vm2179_vm13, %v2178_v50 }
 0xf0b PF: > { %s4333_s1 = sld [smem:[#allocation28_spill]]  ;;  %s4334_s21 = sld [smem:[#allocation36_spill]] }
 0xf0c   : > { %s4335_s10 = sld [smem:[#allocation63_spill]]  ;;  %s2194_s27 = sshll.u32 %s1035_s15, 4  ;;  %s2195_s27 = int_to_ptr.vmem [resolvable:$true] %s2194_s27 }
 0xf0d   : > { %s2182_s16 = scalar_lea.sflag [#allocation6], %s3793_s18  ;;  %s3136_s11 = scalar_lea.vmem %s2195_s27, 16 }
 0xf0e   : > { %p3137_p1 = scmp.ne.s32.totalorder %s2195_s27, %s3136_s11  ;;  %s3294_s5 = smov [#allocation16]  }
 0xf0f   : > { %s3140_s23 = sshll.u32 %s3294_s5, 4  ;;  %s3141_s23 = int_to_ptr.vmem [resolvable:$false] %s3140_s23 }
 0xf10   : > { %s3142_s29 = scalar_lea.vmem %s3141_s23, 32  ;;  %p3143_p10 = scmp.lt.s32.totalorder %s2195_s27, %s3141_s23 }
 0xf11   : > { %s2576_s24 = sshll.u32 %s4333_s1, 4  ;;  %p4336_p8 = scmp.ne.s32.totalorder %s4334_s21, 0 }
 0xf12   : > { %s4077_s8 = scalar_lea.hbm %s4335_s10, %s2576_s24  ;;  %p3144_p11 = scmp.lt.s32.totalorder %s3142_s29, %s3136_s11 }
 0xf13   : > { %p3138_p13 = pnand %p3137_p1, %p4336_p8 }
 0xf14   : > { %p3145_p6 = por %p3144_p11, %p3143_p10 }
 0xf15   : > { %p3139_p0 = pneg %p3138_p13 }
 0xf17   : > { %p3146_p7 = pnand %p3145_p6, %p3139_p0 }
 0xf19   : > { %3149 = shalt.err (!%p3146_p7)
}
 0xf1a   : > { %s3150_s18 = scalar_lea.hbm %s4077_s8, 16  ;;  %s3154_s0 = scalar_lea.hbm %s4335_s10, 32 }
 0xf1b   : > { %p3151_p5 = scmp.ne.s32.totalorder %s4077_s8, %s3150_s18  ;;  %p3155_p9 = scmp.lt.u32.totalorder %s4077_s8, %s4335_s10 }
 0xf1c   : > { %p3156_p2 = scmp.lt.u32.totalorder %s3154_s0, %s3150_s18  ;;  %p3158_p1 = scmp.lt.u32.totalorder %s3150_s18, %s4077_s8 }
 0xf1d   : > { %p3152_p12 = pnand %p3151_p5, %p4336_p8 }
 0xf1e   : > { %p3157_p3 = por %p3156_p2, %p3155_p9 }
 0xf1f   : > { %p3153_p4 = pneg %p3152_p12 }
 0xf20   : > { %p3159_p13 = por %p3158_p1, %p3157_p3 }
 0xf22   : > { %p3160_p0 = pnand %p3159_p13, %p3153_p4 }
 0xf24   : > { %3163 = shalt.err (!%p3160_p0)
}
 0xf25   : > { %2750 = dma.vmem_to_hbm [thread:$0]  (%p4336_p8), %s2195_s27, 16, %s4077_s8, %s2182_s16  }
 0xf26 PF: > { %s4337_s26 = sld [smem:[#allocation31_spill]]  ;;  %s4338_s9 = sld [smem:[#allocation24_spill]] }
 0xf27   : > { %s4339_s13 = sld [smem:[#allocation38_spill]] }
 0xf2c   : > { %p2784_p10 = scmp.ge.s32.totalorder %s4337_s26, 2  ;;  %s2206_s25 = sand.u32 1, %s4338_s9  }
 0xf2d   : > { %p4340_p11 = scmp.ne.s32.totalorder %s4339_s13, 0  ;;  %s2207_s7 = scalar_lea.sflag [#allocation6], %s2206_s25 }
 0xf2f   : > { %p2776_p6 = pnand %p2784_p10, %p4340_p11 }
 0xf31   : > { %3225 = dma.done.wait (!%p2776_p6), %s2207_s7, 16  }
 0xf32   : > { %3227 = vsyncadd (!%p2776_p6), %s2207_s7, 4294967280  ;;  %s45_s6 = sadd.s32 1, %s4337_s26   ;;  %s4341_s3 = sld [smem:[#allocation22_spill]] }
 0xf33   : > { %p42_p7 = scmp.ge.s32.totalorder %s45_s6, 6   ;;  %s4342_s28 = sld [smem:[#allocation23_spill]] }
 0xf34   : > { %s4343_s29 = sld [smem:[#allocation35_spill]]  ;;  %s4344_s30 = sld [smem:[#allocation25_spill]] }
 0xf35   : > { %s4345_s4 = sld [smem:[#allocation26_spill]]  ;;  %s4346_s0 = sld [smem:[#allocation39_spill]] }
 0xf36   : > { %s4347_s23 = sld [smem:[#allocation29_spill]]  ;;  %s4348_s1 = sld [smem:[#allocation30_spill]] }
 0xf37   : > { %s4349_s5 = sld [smem:[#allocation34_spill]]  ;;  %s4350_s24 = sld [smem:[#allocation37_spill]] }
 0xf38   :  { %44 = sbr.rel (!%p42_p7) target bundleno = 38 (0x26), region = 256 }
 0xf3f   :  { %2211 = vsyncpa [#allocation5], 1 }
 0xf40   :  { %2213 = vsyncpa [#allocation5 + $0x1], 1 }
 0xf41   :  { %2214 = vsyncpa [#allocation8], 1 }
 0xf42   :  { %2215 = vsyncpa [#allocation11], 1 }
 0xf43   :  { %2217 = vsyncpa [#allocation11 + $0x1], 1 }
 0xf44   :  { %2218 = vsyncpa [#allocation14], 1 }
 0xf45   :  { %2220 = vsyncpa [#allocation14 + $0x1], 1 }
 0xf46   :  { %2221 = vsyncpa [#allocation6], 1 }
 0xf47   :  { %2223 = vsyncpa [#allocation6 + $0x1], 1 }

</bundles_post_ra>
